<compile_context>
chip_gen: v6e
topology: v6e:2x2x1
jax: 0.10.0
libtpu: 0.0.40
codegen_flags: <defaults>
</compile_context>

<pallas_src>
import math
from functools import partial

import jax
import jax.numpy as jnp
from jax.experimental import pallas as pl
from jax.experimental.pallas import tpu as pltpu

OUT_PAD = 128  # lane-dense padded output width (true output dim = 2)


# ---------------------------------------------------------------------------
# Pallas kernel: full Attention.forward for one tile of batch rows.
# ---------------------------------------------------------------------------
def attention_kernel(x_ref,
                     wWT_ref, bW_ref, wVT_ref,
                     w1T_ref, b1_ref, w2T_ref, b2_ref, w3T_ref, b3_ref,
                     out_ref):
    x = x_ref[...]                                                     # (TB, D)

    # q = W(x); attn = softmax(V(tanh(q)), axis=-1)
    q = jnp.dot(x, wWT_ref[...], preferred_element_type=jnp.float32) + bW_ref[...]
    t = jnp.tanh(q)                                                    # EUP
    s = jnp.dot(t, wVT_ref[...], preferred_element_type=jnp.float32)   # V has no bias
    m = jnp.max(s, axis=-1, keepdims=True)
    e = jnp.exp(s - m)
    attn = e * pl.reciprocal(jnp.sum(e, axis=-1, keepdims=True), approx=True)

    ax = attn * x                                                      # attended_x

    # out = out_layer3(out_layer2(out_layer1(attended_x)))  (no activations)
    h1 = jnp.dot(ax, w1T_ref[...], preferred_element_type=jnp.float32) + b1_ref[...]
    h2 = jnp.dot(h1, w2T_ref[...], preferred_element_type=jnp.float32) + b2_ref[...]
    out = jnp.dot(h2, w3T_ref[...], preferred_element_type=jnp.float32) + b3_ref[...]

    out_ref[...] = out                                                 # (TB, 128) lane-dense


# ---------------------------------------------------------------------------
# Wrapper: one fused pallas_call, grid over batch tiles.
# ---------------------------------------------------------------------------
@partial(jax.jit, static_argnames=("tile_b",))
def attention_forward(x, p, *, tile_b=8):
    B, D = x.shape
    Hf1 = p["w1T"].shape[1]          # 256
    Hf2 = p["w2T"].shape[1]          # 64
    assert B % tile_b == 0, "batch must be a multiple of tile_b"

    # Pad the final projection to 128 output lanes (unmasked stores); padded
    # lanes are zeros, sliced away after the call.  Constant-folded under jit.
    w3T_pad = jnp.zeros((Hf2, OUT_PAD), jnp.float32).at[:, :2].set(p["w3T"])
    b3_pad = jnp.zeros((1, OUT_PAD), jnp.float32).at[:, :2].set(p["b3"])

    # Constant-index weight blocks: fetched once, resident in VMEM across the grid.
    const = lambda shape: pl.BlockSpec(shape, lambda i: (0, 0))

    out_padded = pl.pallas_call(
        attention_kernel,
        out_shape=jax.ShapeDtypeStruct((B, OUT_PAD), jnp.float32),
        grid=(B // tile_b,),
        in_specs=[
            pl.BlockSpec((tile_b, D), lambda i: (i, 0)),    # x tile
            const((D, D)), const((1, D)),                   # W weight^T, bias
            const((D, D)),                                  # V weight^T (no bias)
            const((D, Hf1)), const((1, Hf1)),               # out_layer1
            const((Hf1, Hf2)), const((1, Hf2)),             # out_layer2
            const((Hf2, OUT_PAD)), const((1, OUT_PAD)),     # out_layer3 (lane-padded)
        ],
        out_specs=pl.BlockSpec((tile_b, OUT_PAD), lambda i: (i, 0)),
        compiler_params=pltpu.CompilerParams(
            dimension_semantics=("parallel",)),
    )(x, p["wWT"], p["bW"], p["wVT"],
      p["w1T"], p["b1"], p["w2T"], p["b2"], w3T_pad, b3_pad)

    return out_padded[:, :2]


# ---------------------------------------------------------------------------
# Pure-JAX reference (exact math) for correctness check
# ---------------------------------------------------------------------------
def attention_ref(x, p):
    q = x @ p["wWT"] + p["bW"][0]
    attn = jax.nn.softmax(jnp.tanh(q) @ p["wVT"], axis=1)
    ax = attn * x
    h1 = ax @ p["w1T"] + p["b1"][0]
    h2 = h1 @ p["w2T"] + p["b2"][0]
    return h2 @ p["w3T"] + p["b3"][0]


# ---------------------------------------------------------------------------
# Deterministic parameter init (PyTorch nn.Linear-style uniform; weights stored
# transposed so the kernel computes row-major x @ W^T).
# ---------------------------------------------------------------------------
def init_params(key, D=512):
    ks = jax.random.split(key, 10)

    def lin(kw, kb, fan_in, fan_out, bias=True):
        bound = 1.0 / math.sqrt(fan_in)
        wT = jax.random.uniform(kw, (fan_in, fan_out), jnp.float32, -bound, bound)
        b = (jax.random.uniform(kb, (1, fan_out), jnp.float32, -bound, bound)
             if bias else None)
        return wT, b

    wWT, bW = lin(ks[0], ks[1], D, D)
    wVT, _ = lin(ks[2], ks[3], D, D, bias=False)
    w1T, b1 = lin(ks[4], ks[5], 512, 256)
    w2T, b2 = lin(ks[6], ks[7], 256, 64)
    w3T, b3 = lin(ks[8], ks[9], 64, 2)
    return dict(wWT=wWT, bW=bW, wVT=wVT,
                w1T=w1T, b1=b1, w2T=w2T, b2=b2, w3T=w3T, b3=b3)


if __name__ == "__main__":
    # input_dim is pinned to 512 by out_layer1 = nn.Linear(512, 256).
    B, D = 16, 512
    key = jax.random.PRNGKey(0)
    kx, kp = jax.random.split(key)
    x = jax.random.normal(kx, (B, D), jnp.float32)
    params = init_params(kp, D)

    out = attention_forward(x, params, tile_b=8)
    out = jax.block_until_ready(out)

    ref = attention_ref(x, params)
    assert out.shape == (B, 2)
    # tolerance covers the EUP approximate-reciprocal softmax denominator
    assert jnp.allclose(out, ref, atol=2e-3, rtol=2e-3), "mismatch vs JAX reference"

    print("KERNEL_OK")
</pallas_src>

<mosaic_0001>
module attributes {stable_mosaic.version = 11 : i64} {
  func.func @attention_kernel(%arg0: i32, %arg1: memref<8x512xf32, #tpu.memory_space<vmem>>, %arg2: memref<512x512xf32, #tpu.memory_space<vmem>>, %arg3: memref<1x512xf32, #tpu.memory_space<vmem>>, %arg4: memref<512x512xf32, #tpu.memory_space<vmem>>, %arg5: memref<512x256xf32, #tpu.memory_space<vmem>>, %arg6: memref<1x256xf32, #tpu.memory_space<vmem>>, %arg7: memref<256x64xf32, #tpu.memory_space<vmem>>, %arg8: memref<1x64xf32, #tpu.memory_space<vmem>>, %arg9: memref<64x128xf32, #tpu.memory_space<vmem>>, %arg10: memref<1x128xf32, #tpu.memory_space<vmem>>, %arg11: memref<8x128xf32, #tpu.memory_space<vmem>>) attributes {dimension_semantics = [#tpu.dimension_semantics<parallel>], iteration_bounds = array<i64: 2>, scalar_prefetch = 0 : i64, scratch_operands = 0 : i64, tpu.core_type = #tpu.core_type<tc>, window_params = [{transform_indices = @transform_0, window_bounds = array<i64: 8, 512>}, {pipeline_mode = #tpu.pipeline_mode<synchronous>, transform_indices = @transform_1, window_bounds = array<i64: 512, 512>}, {pipeline_mode = #tpu.pipeline_mode<synchronous>, transform_indices = @transform_2, window_bounds = array<i64: 1, 512>}, {pipeline_mode = #tpu.pipeline_mode<synchronous>, transform_indices = @transform_3, window_bounds = array<i64: 512, 512>}, {pipeline_mode = #tpu.pipeline_mode<synchronous>, transform_indices = @transform_4, window_bounds = array<i64: 512, 256>}, {pipeline_mode = #tpu.pipeline_mode<synchronous>, transform_indices = @transform_5, window_bounds = array<i64: 1, 256>}, {pipeline_mode = #tpu.pipeline_mode<synchronous>, transform_indices = @transform_6, window_bounds = array<i64: 256, 64>}, {pipeline_mode = #tpu.pipeline_mode<synchronous>, transform_indices = @transform_7, window_bounds = array<i64: 1, 64>}, {pipeline_mode = #tpu.pipeline_mode<synchronous>, transform_indices = @transform_8, window_bounds = array<i64: 64, 128>}, {pipeline_mode = #tpu.pipeline_mode<synchronous>, transform_indices = @transform_9, window_bounds = array<i64: 1, 128>}, {transform_indices = @transform_10, window_bounds = array<i64: 8, 128>}]} {
    %c0 = arith.constant 0 : index
    %c0_0 = arith.constant 0 : index
    %0 = vector.load %arg1[%c0, %c0_0] : memref<8x512xf32, #tpu.memory_space<vmem>>, vector<8x512xf32>
    %c0_1 = arith.constant 0 : index
    %c0_2 = arith.constant 0 : index
    %1 = vector.load %arg2[%c0_1, %c0_2] : memref<512x512xf32, #tpu.memory_space<vmem>>, vector<512x512xf32>
    %cst = arith.constant dense<0.000000e+00> : vector<8x512xf32>
    %2 = tpu.matmul %0, %1, %cst {dimension_numbers = #tpu.dot_dimension_numbers<[1], [0], [0], [1], [0, 0, 1, 1], [], []>} : vector<8x512xf32>, vector<512x512xf32>, vector<8x512xf32> -> vector<8x512xf32>
    %c0_3 = arith.constant 0 : index
    %c0_4 = arith.constant 0 : index
    %3 = vector.load %arg3[%c0_3, %c0_4] : memref<1x512xf32, #tpu.memory_space<vmem>>, vector<1x512xf32>
    %4 = vector.broadcast %3 : vector<1x512xf32> to vector<8x512xf32>
    %5 = arith.addf %2, %4 : vector<8x512xf32>
    %6 = math.tanh %5 : vector<8x512xf32>
    %c0_5 = arith.constant 0 : index
    %c0_6 = arith.constant 0 : index
    %7 = vector.load %arg4[%c0_5, %c0_6] : memref<512x512xf32, #tpu.memory_space<vmem>>, vector<512x512xf32>
    %cst_7 = arith.constant dense<0.000000e+00> : vector<8x512xf32>
    %8 = tpu.matmul %6, %7, %cst_7 {dimension_numbers = #tpu.dot_dimension_numbers<[1], [0], [0], [1], [0, 0, 1, 1], [], []>} : vector<8x512xf32>, vector<512x512xf32>, vector<8x512xf32> -> vector<8x512xf32>
    %cst_8 = arith.constant dense<0xFF800000> : vector<8xf32>
    %9 = vector.multi_reduction <maximumf>, %8, %cst_8 [1] : vector<8x512xf32> to vector<8xf32>
    %10 = vector.shape_cast %9 : vector<8xf32> to vector<8x1xf32>
    %11 = vector.broadcast %10 : vector<8x1xf32> to vector<8x512xf32>
    %12 = arith.subf %8, %11 : vector<8x512xf32>
    %13 = math.exp %12 : vector<8x512xf32>
    %cst_9 = arith.constant dense<0.000000e+00> : vector<8xf32>
    %14 = vector.multi_reduction <add>, %13, %cst_9 [1] : vector<8x512xf32> to vector<8xf32>
    %15 = vector.shape_cast %14 : vector<8xf32> to vector<8x1xf32>
    %16 = tpu.reciprocal %15 {approx = true} : vector<8x1xf32> -> vector<8x1xf32>
    %17 = vector.broadcast %16 : vector<8x1xf32> to vector<8x512xf32>
    %18 = arith.mulf %13, %17 : vector<8x512xf32>
    %19 = arith.mulf %18, %0 : vector<8x512xf32>
    %c0_10 = arith.constant 0 : index
    %c0_11 = arith.constant 0 : index
    %20 = vector.load %arg5[%c0_10, %c0_11] : memref<512x256xf32, #tpu.memory_space<vmem>>, vector<512x256xf32>
    %cst_12 = arith.constant dense<0.000000e+00> : vector<8x256xf32>
    %21 = tpu.matmul %19, %20, %cst_12 {dimension_numbers = #tpu.dot_dimension_numbers<[1], [0], [0], [1], [0, 0, 1, 1], [], []>} : vector<8x512xf32>, vector<512x256xf32>, vector<8x256xf32> -> vector<8x256xf32>
    %c0_13 = arith.constant 0 : index
    %c0_14 = arith.constant 0 : index
    %22 = vector.load %arg6[%c0_13, %c0_14] : memref<1x256xf32, #tpu.memory_space<vmem>>, vector<1x256xf32>
    %23 = vector.broadcast %22 : vector<1x256xf32> to vector<8x256xf32>
    %24 = arith.addf %21, %23 : vector<8x256xf32>
    %c0_15 = arith.constant 0 : index
    %c0_16 = arith.constant 0 : index
    %25 = vector.load %arg7[%c0_15, %c0_16] : memref<256x64xf32, #tpu.memory_space<vmem>>, vector<256x64xf32>
    %cst_17 = arith.constant dense<0.000000e+00> : vector<8x64xf32>
    %26 = tpu.matmul %24, %25, %cst_17 {dimension_numbers = #tpu.dot_dimension_numbers<[1], [0], [0], [1], [0, 0, 1, 1], [], []>} : vector<8x256xf32>, vector<256x64xf32>, vector<8x64xf32> -> vector<8x64xf32>
    %c0_18 = arith.constant 0 : index
    %c0_19 = arith.constant 0 : index
    %27 = vector.load %arg8[%c0_18, %c0_19] : memref<1x64xf32, #tpu.memory_space<vmem>>, vector<1x64xf32>
    %28 = vector.broadcast %27 : vector<1x64xf32> to vector<8x64xf32>
    %29 = arith.addf %26, %28 : vector<8x64xf32>
    %c0_20 = arith.constant 0 : index
    %c0_21 = arith.constant 0 : index
    %30 = vector.load %arg9[%c0_20, %c0_21] : memref<64x128xf32, #tpu.memory_space<vmem>>, vector<64x128xf32>
    %cst_22 = arith.constant dense<0.000000e+00> : vector<8x128xf32>
    %31 = tpu.matmul %29, %30, %cst_22 {dimension_numbers = #tpu.dot_dimension_numbers<[1], [0], [0], [1], [0, 0, 1, 1], [], []>} : vector<8x64xf32>, vector<64x128xf32>, vector<8x128xf32> -> vector<8x128xf32>
    %c0_23 = arith.constant 0 : index
    %c0_24 = arith.constant 0 : index
    %32 = vector.load %arg10[%c0_23, %c0_24] : memref<1x128xf32, #tpu.memory_space<vmem>>, vector<1x128xf32>
    %33 = vector.broadcast %32 : vector<1x128xf32> to vector<8x128xf32>
    %34 = arith.addf %31, %33 : vector<8x128xf32>
    %c0_25 = arith.constant 0 : index
    %c0_26 = arith.constant 0 : index
    %35 = vector.load %arg11[%c0_25, %c0_26] : memref<8x128xf32, #tpu.memory_space<vmem>>, vector<8x128xf32>
    tpu.vector_store %arg11[%c0_25, %c0_26], %34 {strides = array<i32>} : memref<8x128xf32, #tpu.memory_space<vmem>>, vector<8x128xf32>,
    return
  }
  func.func @transform_0(%arg0: i32) -> (i32, i32) {
    %c0_i32 = arith.constant 0 : i32
    %c0_i32_0 = arith.constant 0 : i32
    return %arg0, %c0_i32 : i32, i32
  }
  func.func @transform_1(%arg0: i32) -> (i32, i32) {
    %c0_i32 = arith.constant 0 : i32
    %c0_i32_0 = arith.constant 0 : i32
    %c0_i32_1 = arith.constant 0 : i32
    return %c0_i32, %c0_i32_0 : i32, i32
  }
  func.func @transform_2(%arg0: i32) -> (i32, i32) {
    %c0_i32 = arith.constant 0 : i32
    %c0_i32_0 = arith.constant 0 : i32
    %c0_i32_1 = arith.constant 0 : i32
    return %c0_i32, %c0_i32_0 : i32, i32
  }
  func.func @transform_3(%arg0: i32) -> (i32, i32) {
    %c0_i32 = arith.constant 0 : i32
    %c0_i32_0 = arith.constant 0 : i32
    %c0_i32_1 = arith.constant 0 : i32
    return %c0_i32, %c0_i32_0 : i32, i32
  }
  func.func @transform_4(%arg0: i32) -> (i32, i32) {
    %c0_i32 = arith.constant 0 : i32
    %c0_i32_0 = arith.constant 0 : i32
    %c0_i32_1 = arith.constant 0 : i32
    return %c0_i32, %c0_i32_0 : i32, i32
  }
  func.func @transform_5(%arg0: i32) -> (i32, i32) {
    %c0_i32 = arith.constant 0 : i32
    %c0_i32_0 = arith.constant 0 : i32
    %c0_i32_1 = arith.constant 0 : i32
    return %c0_i32, %c0_i32_0 : i32, i32
  }
  func.func @transform_6(%arg0: i32) -> (i32, i32) {
    %c0_i32 = arith.constant 0 : i32
    %c0_i32_0 = arith.constant 0 : i32
    %c0_i32_1 = arith.constant 0 : i32
    return %c0_i32, %c0_i32_0 : i32, i32
  }
  func.func @transform_7(%arg0: i32) -> (i32, i32) {
    %c0_i32 = arith.constant 0 : i32
    %c0_i32_0 = arith.constant 0 : i32
    %c0_i32_1 = arith.constant 0 : i32
    return %c0_i32, %c0_i32_0 : i32, i32
  }
  func.func @transform_8(%arg0: i32) -> (i32, i32) {
    %c0_i32 = arith.constant 0 : i32
    %c0_i32_0 = arith.constant 0 : i32
    %c0_i32_1 = arith.constant 0 : i32
    return %c0_i32, %c0_i32_0 : i32, i32
  }
  func.func @transform_9(%arg0: i32) -> (i32, i32) {
    %c0_i32 = arith.constant 0 : i32
    %c0_i32_0 = arith.constant 0 : i32
    %c0_i32_1 = arith.constant 0 : i32
    return %c0_i32, %c0_i32_0 : i32, i32
  }
  func.func @transform_10(%arg0: i32) -> (i32, i32) {
    %c0_i32 = arith.constant 0 : i32
    %c0_i32_0 = arith.constant 0 : i32
    return %arg0, %c0_i32 : i32, i32
  }
}

</mosaic_0001>

<bundles_post_ra>
// kernel: attention_forward.1
= control target key start
LH: loop header
LB: loop body
LE: loop exit
PB: predicated region body
PF: predicated region fallthrough
CT: control target
= control target key end

     0   :  { %15 = vsyncpa [#allocation3], 0  ;;  %s2724_s0 = inlined_call_operand.vmem [shape: f32[16,512], index: 0, kind: input, shape index: {}]   ;;  %s2725_s1 = inlined_call_operand.hbm [shape: f32[512,512], index: 1, kind: input, shape index: {}]   ;;  %s2726_s2 = inlined_call_operand.vmem [shape: f32[1,512], index: 2, kind: input, shape index: {}]   ;;  %s2727_s3 = inlined_call_operand.hbm [shape: f32[512,512], index: 3, kind: input, shape index: {}]   ;;  %s2728_s4 = inlined_call_operand.hbm [shape: f32[512,256], index: 4, kind: input, shape index: {}]   ;;  %s2729_s5 = inlined_call_operand.vmem [shape: f32[1,256], index: 5, kind: input, shape index: {}]   ;;  %s2730_s6 = inlined_call_operand.vmem [shape: f32[256,64], index: 6, kind: input, shape index: {}]   ;;  %s2731_s7 = inlined_call_operand.vmem [shape: f32[1,64], index: 7, kind: input, shape index: {}]   ;;  %s2732_s8 = inlined_call_operand.vmem [shape: f32[64,128], index: 8, kind: input, shape index: {}]   ;;  %s2733_s9 = inlined_call_operand.vmem [shape: f32[1,128], index: 9, kind: input, shape index: {}]   ;;  %s2734_s10 = inlined_call_operand.vmem [shape: f32[16,128], index: 10, kind: output, shape index: {}]  }
   0x1   :  { %16 = vsyncpa [#allocation5], 0  ;;  %s2416_s13 = smov 0  }
   0x2 LB: > { %s2422_s14 = sadd.s32 4294967295, %s2350_s13   ;;  %p2110_p0 = scmp.ge.s32.totalorder %s2350_s13, 1  ;;  %s2350_s13 = sphi %s2416_s13, %s22_s13  }
   0x3   : > { %p268_p1 = scmp.lt.s32.totalorder %s2350_s13, 3  ;;  %p2213_p2 = scmp.eq.s32.totalorder %s2422_s14, 0 }
   0x4   : > { %s2352_s16 = smov [#allocation4]   ;;  %s2353_s18 = smov [#allocation2]  }
   0x5   : > { %p2427_p3 = pnand %p2110_p0, %p268_p1  ;;  %s296_s17 = sshll.u32 %s2352_s16, 4  ;;  %s297_s17 = int_to_ptr.vmem [resolvable:$true] %s296_s17 }
   0x6   : > { %s280_s19 = sshll.u32 %s2353_s18, 4  ;;  %s2354_s21 = smov [#allocation6]   ;;  %s2433_s19 = int_to_ptr.vmem [resolvable:$true] %s280_s19 }
   0x7   : > { %p2203_p4 = pneg %p2427_p3  ;;  %s309_s22 = sshll.u32 %s2354_s21, 4  ;;  %s2441_s22 = int_to_ptr.vmem [resolvable:$true] %s309_s22 }
   0x8   : > { %s2269_s23 = scalar_lea.vmem %s297_s17, 32768  ;;  %p2277_p10 = scmp.lt.s32.totalorder %s297_s17, %s297_s17 }
   0x9   : > { %p2437_p5 = pnand %p2213_p2, %p2203_p4  ;;  %p2270_p7 = scmp.ne.s32.totalorder %s297_s17, %s2269_s23 }
   0xa   : > { %p2278_p11 = scmp.lt.s32.totalorder %s2269_s23, %s2269_s23 }
   0xb   : > { %p2260_p6 = pneg %p2437_p5 }
   0xc   : > { %p2279_p12 = por %p2278_p11, %p2277_p10 }
   0xd   : > { %p2272_p8 = pnand %p2270_p7, %p2260_p6 }
   0xf   : > { %p2273_p9 = pneg %p2272_p8 }
  0x11   : > { %p2280_p13 = pnand %p2279_p12, %p2273_p9 }
  0x13   : > { %2283 = shalt.err (!%p2280_p13)
}
  0x14   : > { %s2355_s24 = smov 512   ;;  %s2356_s25 = smov 32  }
  0x15   : > { %2209 = dma.hbm_to_vmem [thread:$0]  (!%p2437_p5), %s2727_s3, 32768, %s297_s17, [#allocation5], %s2355_s24, %s2355_s24, %s2356_s25  }
  0x16   : > { %s2295_s28 = scalar_lea.vmem %s2433_s19, 32768  ;;  %p2303_p7 = scmp.lt.s32.totalorder %s2433_s19, %s2433_s19 }
  0x17   : > { %p2296_p0 = scmp.ne.s32.totalorder %s2433_s19, %s2295_s28  ;;  %p2304_p8 = scmp.lt.s32.totalorder %s2295_s28, %s2295_s28 }
  0x19   : > { %p2298_p1 = pnand %p2296_p0, %p2260_p6  ;;  %p2305_p9 = por %p2304_p8, %p2303_p7 }
  0x1b   : > { %p2299_p4 = pneg %p2298_p1 }
  0x1d   : > { %p2306_p10 = pnand %p2305_p9, %p2299_p4 }
  0x1f   : > { %2309 = shalt.err (!%p2306_p10)
}
  0x20   : > { %2206 = dma.hbm_to_vmem [thread:$0]  (!%p2437_p5), %s2725_s1, 32768, %s2433_s19, [#allocation3], %s2355_s24, %s2355_s24, %s2356_s25  }
  0x21   : > { %s2321_s11 = scalar_lea.vmem %s2441_s22, 16384  ;;  %p2329_p0 = scmp.lt.s32.totalorder %s2441_s22, %s2441_s22 }
  0x22   : > { %p2322_p11 = scmp.ne.s32.totalorder %s2441_s22, %s2321_s11  ;;  %p2330_p1 = scmp.lt.s32.totalorder %s2321_s11, %s2321_s11 }
  0x24   : > { %p2324_p12 = pnand %p2322_p11, %p2260_p6  ;;  %p2331_p4 = por %p2330_p1, %p2329_p0 }
  0x26   : > { %p2325_p13 = pneg %p2324_p12 }
  0x28   : > { %p2332_p7 = pnand %p2331_p4, %p2325_p13 }
  0x2a   : > { %2335 = shalt.err (!%p2332_p7)
}
  0x2b   : > { %s2357_s12 = smov 256   ;;  %s2358_s16 = smov 16  }
  0x2c   : > { %2212 = dma.hbm_to_vmem [thread:$0]  (!%p2437_p5), %s2728_s4, 16384, %s2441_s22, [#allocation5], %s2357_s12, %s2357_s12, %s2358_s16  }
  0x2d   : > { %348 = sbr.rel (%p2427_p3) target bundleno = 1579 (0x62b), region = 60 }
  0x32   : > { %2341 = dma.done.wait (%p2213_p2), [#allocation3], 32768  }
  0x33   : > { %2343 = vsyncadd (%p2213_p2), [#allocation3], 4294934528 }
  0x34   : > { %2345 = dma.done.wait (%p2213_p2), [#allocation5], 49152  }
  0x35   : > { %2347 = vsyncadd (%p2213_p2), [#allocation5], 4294918144  ;;  %v467_v0 = vld [vmem:[#allocation2 + $0x1e8] sm:$0xff]  ;;  %v466_v2 = vld [vmem:[#allocation2 + $0x1e0] sm:$0xff]  ;;  %p393_p2 = scmp.lt.s32.totalorder %s2422_s14, 1  ;;  %vm2360_vm0 = vmmov 0  }
  0x36   : > { %v595_v1 = vld [vmem:[#allocation2 + $0x5e8] sm:$0xff]  ;;  %684 = vmatprep.subr.mxu0 %v467_v0  ;;  %v594_v3 = vld [vmem:[#allocation2 + $0x5e0] sm:$0xff]  ;;  %vm1949_vm1 = vcmask 523264  }
  0x37   : > { %755 = vmatprep.subr.mxu1 %v595_v1  ;;  %v463_v4 = vld [vmem:[#allocation2 + $0x1c8] sm:$0xff]  ;;  %685 = vmatpush1.msra.mxu0 %v466_v2  ;;  %v462_v6 = vld [vmem:[#allocation2 + $0x1c0] sm:$0xff]  ;;  %s2738_s14 = smov (!%p393_p2, %s2422_s14), 1 }
  0x38   : > { %v591_v5 = vld [vmem:[#allocation2 + $0x5c8] sm:$0xff]  ;;  %756 = vmatpush1.msra.mxu1 %v594_v3  ;;  %v590_v7 = vld [vmem:[#allocation2 + $0x5c0] sm:$0xff]  ;;  %686 = vmatprep.subr.mxu0 %v463_v4  ;;  %s2127_s15 = sshll.u32 %s2738_s14, 5 }
  0x39   : > { %v459_v8 = vld [vmem:[#allocation2 + $0x1a8] sm:$0xff]  ;;  %757 = vmatprep.subr.mxu1 %v591_v5  ;;  %v458_v10 = vld [vmem:[#allocation2 + $0x1a0] sm:$0xff]  ;;  %687 = vmatpush1.msra.mxu0 %v462_v6  ;;  %s2499_s21 = scalar_lea.vmem %s2724_s0, %s2127_s15  ;;  %s2121_s15 = sshll.u32 %s2738_s14, 3 }
  0x3a   : > { %v587_v9 = vld [vmem:[#allocation2 + $0x5a8] sm:$0xff]  ;;  %v586_v11 = vld [vmem:[#allocation2 + $0x5a0] sm:$0xff]  ;;  %758 = vmatpush1.msra.mxu1 %v590_v7  ;;  %688 = vmatprep.subr.mxu0 %v459_v8  ;;  %s401_s23 = scalar_lea.vmem %s2734_s10, %s2121_s15 }
  0x3b   : > { %v455_v12 = vld [vmem:[#allocation2 + $0x188] sm:$0xff]  ;;  %759 = vmatprep.subr.mxu1 %v587_v9  ;;  %v454_v14 = vld [vmem:[#allocation2 + $0x180] sm:$0xff]  ;;  %689 = vmatpush1.msra.mxu0 %v458_v10 }
  0x3c   : > { %v583_v13 = vld [vmem:[#allocation2 + $0x588] sm:$0xff]  ;;  %v582_v15 = vld [vmem:[#allocation2 + $0x580] sm:$0xff]  ;;  %760 = vmatpush1.msra.mxu1 %v586_v11  ;;  %690 = vmatprep.subr.mxu0 %v455_v12 }
  0x3d   : > { %v451_v16 = vld [vmem:[#allocation2 + $0x168] sm:$0xff]  ;;  %761 = vmatprep.subr.mxu1 %v583_v13  ;;  %v450_v18 = vld [vmem:[#allocation2 + $0x160] sm:$0xff]  ;;  %691 = vmatpush1.msra.mxu0 %v454_v14 }
  0x3e   : > { %v579_v17 = vld [vmem:[#allocation2 + $0x568] sm:$0xff]  ;;  %v578_v19 = vld [vmem:[#allocation2 + $0x560] sm:$0xff]  ;;  %762 = vmatpush1.msra.mxu1 %v582_v15  ;;  %692 = vmatprep.subr.mxu0 %v451_v16 }
  0x3f   : > { %v447_v20 = vld [vmem:[#allocation2 + $0x148] sm:$0xff]  ;;  %763 = vmatprep.subr.mxu1 %v579_v17  ;;  %v446_v22 = vld [vmem:[#allocation2 + $0x140] sm:$0xff]  ;;  %693 = vmatpush1.msra.mxu0 %v450_v18 }
  0x40   : > { %v575_v21 = vld [vmem:[#allocation2 + $0x548] sm:$0xff]  ;;  %v574_v23 = vld [vmem:[#allocation2 + $0x540] sm:$0xff]  ;;  %764 = vmatpush1.msra.mxu1 %v578_v19  ;;  %694 = vmatprep.subr.mxu0 %v447_v20 }
  0x41   : > { %v443_v24 = vld [vmem:[#allocation2 + $0x128] sm:$0xff]  ;;  %765 = vmatprep.subr.mxu1 %v575_v21  ;;  %v442_v26 = vld [vmem:[#allocation2 + $0x120] sm:$0xff]  ;;  %695 = vmatpush1.msra.mxu0 %v446_v22 }
  0x42   : > { %v571_v25 = vld [vmem:[#allocation2 + $0x528] sm:$0xff]  ;;  %v570_v27 = vld [vmem:[#allocation2 + $0x520] sm:$0xff]  ;;  %766 = vmatpush1.msra.mxu1 %v574_v23  ;;  %696 = vmatprep.subr.mxu0 %v443_v24 }
  0x43   : > { %v439_v28 = vld [vmem:[#allocation2 + $0x108] sm:$0xff]  ;;  %767 = vmatprep.subr.mxu1 %v571_v25  ;;  %v438_v30 = vld [vmem:[#allocation2 + $0x100] sm:$0xff]  ;;  %697 = vmatpush1.msra.mxu0 %v442_v26 }
  0x44   : > { %v567_v29 = vld [vmem:[#allocation2 + $0x508] sm:$0xff]  ;;  %v566_v31 = vld [vmem:[#allocation2 + $0x500] sm:$0xff]  ;;  %768 = vmatpush1.msra.mxu1 %v570_v27  ;;  %698 = vmatprep.subr.mxu0 %v439_v28 }
  0x45   : > { %v435_v32 = vld [vmem:[#allocation2 + $0xe8] sm:$0xff]  ;;  %769 = vmatprep.subr.mxu1 %v567_v29  ;;  %v434_v34 = vld [vmem:[#allocation2 + $0xe0] sm:$0xff]  ;;  %699 = vmatpush1.msra.mxu0 %v438_v30 }
  0x46   : > { %v563_v33 = vld [vmem:[#allocation2 + $0x4e8] sm:$0xff]  ;;  %v562_v35 = vld [vmem:[#allocation2 + $0x4e0] sm:$0xff]  ;;  %770 = vmatpush1.msra.mxu1 %v566_v31  ;;  %700 = vmatprep.subr.mxu0 %v435_v32 }
  0x47   : > { %v431_v36 = vld [vmem:[#allocation2 + $0xc8] sm:$0xff]  ;;  %771 = vmatprep.subr.mxu1 %v563_v33  ;;  %v430_v38 = vld [vmem:[#allocation2 + $0xc0] sm:$0xff]  ;;  %701 = vmatpush1.msra.mxu0 %v434_v34 }
  0x48   : > { %v559_v37 = vld [vmem:[#allocation2 + $0x4c8] sm:$0xff]  ;;  %v558_v39 = vld [vmem:[#allocation2 + $0x4c0] sm:$0xff]  ;;  %772 = vmatpush1.msra.mxu1 %v562_v35  ;;  %702 = vmatprep.subr.mxu0 %v431_v36 }
  0x49   : > { %v427_v40 = vld [vmem:[#allocation2 + $0xa8] sm:$0xff]  ;;  %773 = vmatprep.subr.mxu1 %v559_v37  ;;  %v426_v42 = vld [vmem:[#allocation2 + $0xa0] sm:$0xff]  ;;  %703 = vmatpush1.msra.mxu0 %v430_v38 }
  0x4a   : > { %v555_v41 = vld [vmem:[#allocation2 + $0x4a8] sm:$0xff]  ;;  %v554_v43 = vld [vmem:[#allocation2 + $0x4a0] sm:$0xff]  ;;  %774 = vmatpush1.msra.mxu1 %v558_v39  ;;  %704 = vmatprep.subr.mxu0 %v427_v40 }
  0x4b   : > { %v423_v44 = vld [vmem:[#allocation2 + $0x88] sm:$0xff]  ;;  %775 = vmatprep.subr.mxu1 %v555_v41  ;;  %v422_v46 = vld [vmem:[#allocation2 + $0x80] sm:$0xff]  ;;  %705 = vmatpush1.msra.mxu0 %v426_v42 }
  0x4c   : > { %v551_v45 = vld [vmem:[#allocation2 + $0x488] sm:$0xff]  ;;  %v550_v47 = vld [vmem:[#allocation2 + $0x480] sm:$0xff]  ;;  %776 = vmatpush1.msra.mxu1 %v554_v43  ;;  %706 = vmatprep.subr.mxu0 %v423_v44 }
  0x4d   : > { %v419_v48 = vld [vmem:[#allocation2 + $0x68] sm:$0xff]  ;;  %777 = vmatprep.subr.mxu1 %v551_v45  ;;  %v418_v50 = vld [vmem:[#allocation2 + $0x60] sm:$0xff]  ;;  %707 = vmatpush1.msra.mxu0 %v422_v46 }
  0x4e   : > { %v547_v49 = vld [vmem:[#allocation2 + $0x468] sm:$0xff]  ;;  %v546_v51 = vld [vmem:[#allocation2 + $0x460] sm:$0xff]  ;;  %778 = vmatpush1.msra.mxu1 %v550_v47  ;;  %708 = vmatprep.subr.mxu0 %v419_v48 }
  0x4f   : > { %v415_v52 = vld [vmem:[#allocation2 + $0x48] sm:$0xff]  ;;  %779 = vmatprep.subr.mxu1 %v547_v49  ;;  %v414_v54 = vld [vmem:[#allocation2 + $0x40] sm:$0xff]  ;;  %709 = vmatpush1.msra.mxu0 %v418_v50 }
  0x50   : > { %v543_v53 = vld [vmem:[#allocation2 + $0x448] sm:$0xff]  ;;  %v542_v55 = vld [vmem:[#allocation2 + $0x440] sm:$0xff]  ;;  %780 = vmatpush1.msra.mxu1 %v546_v51  ;;  %710 = vmatprep.subr.mxu0 %v415_v52 }
  0x51   : > { %v411_v56 = vld [vmem:[#allocation2 + $0x28] sm:$0xff]  ;;  %781 = vmatprep.subr.mxu1 %v543_v53  ;;  %v410_v58 = vld [vmem:[#allocation2 + $0x20] sm:$0xff]  ;;  %711 = vmatpush1.msra.mxu0 %v414_v54 }
  0x52   : > { %v539_v57 = vld [vmem:[#allocation2 + $0x428] sm:$0xff]  ;;  %v538_v59 = vld [vmem:[#allocation2 + $0x420] sm:$0xff]  ;;  %782 = vmatpush1.msra.mxu1 %v542_v55  ;;  %712 = vmatprep.subr.mxu0 %v411_v56 }
  0x53   : > { %v407_v60 = vld [vmem:[#allocation2 + $0x8] sm:$0xff]  ;;  %783 = vmatprep.subr.mxu1 %v539_v57  ;;  %v406_v62 = vld [vmem:[#allocation2] sm:$0xff]  ;;  %713 = vmatpush1.msra.mxu0 %v410_v58 }
  0x54   : > { %v535_v61 = vld [vmem:[#allocation2 + $0x408] sm:$0xff]  ;;  %v534_v63 = vld [vmem:[#allocation2 + $0x400] sm:$0xff]  ;;  %784 = vmatpush1.msra.mxu1 %v538_v59  ;;  %714 = vmatprep.subr.mxu0 %v407_v60 }
  0x55   : > { %v531_v0 = vld [vmem:[#allocation2 + $0x3e8] sm:$0xff]  ;;  %785 = vmatprep.subr.mxu1 %v535_v61  ;;  %v530_v2 = vld [vmem:[#allocation2 + $0x3e0] sm:$0xff]  ;;  %715 = vmatpush1.msra.mxu0 %v406_v62 }
  0x56   : > { %v659_v1 = vld [vmem:[#allocation2 + $0x7e8] sm:$0xff]  ;;  %v658_v3 = vld [vmem:[#allocation2 + $0x7e0] sm:$0xff]  ;;  %786 = vmatpush1.msra.mxu1 %v534_v63  ;;  %716 = vmatprep.subr.mxu0 %v531_v0 }
  0x57   : > { %v527_v4 = vld [vmem:[#allocation2 + $0x3c8] sm:$0xff]  ;;  %787 = vmatprep.subr.mxu1 %v659_v1  ;;  %v526_v6 = vld [vmem:[#allocation2 + $0x3c0] sm:$0xff]  ;;  %717 = vmatpush2.msra.mxu0 %v530_v2  ;;  %v2508_v2 = vld [vmem:[%s2499_s21 + $0x18] sm:$0xff] }
  0x58   : > { %v655_v5 = vld [vmem:[#allocation2 + $0x7c8] sm:$0xff]  ;;  %v654_v7 = vld [vmem:[#allocation2 + $0x7c0] sm:$0xff]  ;;  %788 = vmatpush2.msra.mxu1 %v658_v3  ;;  %718 = vmatprep.subr.mxu0 %v527_v4  ;;  %v469_v3 = vld [vmem:[#allocation2 + $0x1f8] sm:$0xff] }
  0x59   : > { %v523_v8 = vld [vmem:[#allocation2 + $0x3a8] sm:$0xff]  ;;  %789 = vmatprep.subr.mxu1 %v655_v5  ;;  %v522_v10 = vld [vmem:[#allocation2 + $0x3a0] sm:$0xff]  ;;  %719 = vmatpush2.msra.mxu0 %v526_v6  ;;  %v597_v4 = vld [vmem:[#allocation2 + $0x5f8] sm:$0xff] }
  0x5a   : > { %v651_v9 = vld [vmem:[#allocation2 + $0x7a8] sm:$0xff]  ;;  %v650_v11 = vld [vmem:[#allocation2 + $0x7a0] sm:$0xff]  ;;  %790 = vmatpush2.msra.mxu1 %v654_v7  ;;  %720 = vmatprep.subr.mxu0 %v523_v8  ;;  %v2512_v5 = vld [vmem:[%s2499_s21 + $0x10] sm:$0xff] }
  0x5b   : > { %v519_v12 = vld [vmem:[#allocation2 + $0x388] sm:$0xff]  ;;  %791 = vmatprep.subr.mxu1 %v651_v9  ;;  %v518_v14 = vld [vmem:[#allocation2 + $0x380] sm:$0xff]  ;;  %721 = vmatpush2.msra.mxu0 %v522_v10  ;;  %v468_v6 = vld [vmem:[#allocation2 + $0x1f0] sm:$0xff] }
  0x5c   : > { %v647_v13 = vld [vmem:[#allocation2 + $0x788] sm:$0xff]  ;;  %v646_v15 = vld [vmem:[#allocation2 + $0x780] sm:$0xff]  ;;  %792 = vmatpush2.msra.mxu1 %v650_v11  ;;  %722 = vmatprep.subr.mxu0 %v519_v12  ;;  %v596_v7 = vld [vmem:[#allocation2 + $0x5f0] sm:$0xff] }
  0x5d   : > { %v515_v16 = vld [vmem:[#allocation2 + $0x368] sm:$0xff]  ;;  %793 = vmatprep.subr.mxu1 %v647_v13  ;;  %v514_v18 = vld [vmem:[#allocation2 + $0x360] sm:$0xff]  ;;  %723 = vmatpush2.msra.mxu0 %v518_v14  ;;  %v465_v8 = vld [vmem:[#allocation2 + $0x1d8] sm:$0xff] }
  0x5e   : > { %v643_v17 = vld [vmem:[#allocation2 + $0x768] sm:$0xff]  ;;  %v642_v19 = vld [vmem:[#allocation2 + $0x760] sm:$0xff]  ;;  %794 = vmatpush2.msra.mxu1 %v646_v15  ;;  %724 = vmatprep.subr.mxu0 %v515_v16  ;;  %v593_v9 = vld [vmem:[#allocation2 + $0x5d8] sm:$0xff] }
  0x5f   : > { %v511_v20 = vld [vmem:[#allocation2 + $0x348] sm:$0xff]  ;;  %795 = vmatprep.subr.mxu1 %v643_v17  ;;  %v510_v22 = vld [vmem:[#allocation2 + $0x340] sm:$0xff]  ;;  %725 = vmatpush2.msra.mxu0 %v514_v18  ;;  %v464_v10 = vld [vmem:[#allocation2 + $0x1d0] sm:$0xff] }
  0x60   : > { %v639_v21 = vld [vmem:[#allocation2 + $0x748] sm:$0xff]  ;;  %v638_v23 = vld [vmem:[#allocation2 + $0x740] sm:$0xff]  ;;  %796 = vmatpush2.msra.mxu1 %v642_v19  ;;  %726 = vmatprep.subr.mxu0 %v511_v20  ;;  %v592_v11 = vld [vmem:[#allocation2 + $0x5d0] sm:$0xff] }
  0x61   : > { %v507_v24 = vld [vmem:[#allocation2 + $0x328] sm:$0xff]  ;;  %797 = vmatprep.subr.mxu1 %v639_v21  ;;  %v506_v26 = vld [vmem:[#allocation2 + $0x320] sm:$0xff]  ;;  %727 = vmatpush2.msra.mxu0 %v510_v22  ;;  %v461_v12 = vld [vmem:[#allocation2 + $0x1b8] sm:$0xff] }
  0x62   : > { %v635_v25 = vld [vmem:[#allocation2 + $0x728] sm:$0xff]  ;;  %v634_v27 = vld [vmem:[#allocation2 + $0x720] sm:$0xff]  ;;  %798 = vmatpush2.msra.mxu1 %v638_v23  ;;  %728 = vmatprep.subr.mxu0 %v507_v24  ;;  %v589_v13 = vld [vmem:[#allocation2 + $0x5b8] sm:$0xff] }
  0x63   : > { %v503_v28 = vld [vmem:[#allocation2 + $0x308] sm:$0xff]  ;;  %799 = vmatprep.subr.mxu1 %v635_v25  ;;  %v502_v30 = vld [vmem:[#allocation2 + $0x300] sm:$0xff]  ;;  %729 = vmatpush2.msra.mxu0 %v506_v26  ;;  %v460_v14 = vld [vmem:[#allocation2 + $0x1b0] sm:$0xff] }
  0x64   : > { %v631_v29 = vld [vmem:[#allocation2 + $0x708] sm:$0xff]  ;;  %v630_v31 = vld [vmem:[#allocation2 + $0x700] sm:$0xff]  ;;  %800 = vmatpush2.msra.mxu1 %v634_v27  ;;  %730 = vmatprep.subr.mxu0 %v503_v28  ;;  %v588_v15 = vld [vmem:[#allocation2 + $0x5b0] sm:$0xff] }
  0x65   : > { %v499_v32 = vld [vmem:[#allocation2 + $0x2e8] sm:$0xff]  ;;  %801 = vmatprep.subr.mxu1 %v631_v29  ;;  %v498_v34 = vld [vmem:[#allocation2 + $0x2e0] sm:$0xff]  ;;  %731 = vmatpush2.msra.mxu0 %v502_v30  ;;  %v457_v16 = vld [vmem:[#allocation2 + $0x198] sm:$0xff] }
  0x66   : > { %v627_v33 = vld [vmem:[#allocation2 + $0x6e8] sm:$0xff]  ;;  %v626_v35 = vld [vmem:[#allocation2 + $0x6e0] sm:$0xff]  ;;  %802 = vmatpush2.msra.mxu1 %v630_v31  ;;  %732 = vmatprep.subr.mxu0 %v499_v32  ;;  %v585_v17 = vld [vmem:[#allocation2 + $0x598] sm:$0xff] }
  0x67   : > { %v495_v36 = vld [vmem:[#allocation2 + $0x2c8] sm:$0xff]  ;;  %803 = vmatprep.subr.mxu1 %v627_v33  ;;  %v494_v38 = vld [vmem:[#allocation2 + $0x2c0] sm:$0xff]  ;;  %733 = vmatpush2.msra.mxu0 %v498_v34  ;;  %v456_v18 = vld [vmem:[#allocation2 + $0x190] sm:$0xff] }
  0x68   : > { %v623_v37 = vld [vmem:[#allocation2 + $0x6c8] sm:$0xff]  ;;  %v622_v39 = vld [vmem:[#allocation2 + $0x6c0] sm:$0xff]  ;;  %804 = vmatpush2.msra.mxu1 %v626_v35  ;;  %734 = vmatprep.subr.mxu0 %v495_v36  ;;  %v584_v19 = vld [vmem:[#allocation2 + $0x590] sm:$0xff] }
  0x69   : > { %v491_v40 = vld [vmem:[#allocation2 + $0x2a8] sm:$0xff]  ;;  %805 = vmatprep.subr.mxu1 %v623_v37  ;;  %v490_v42 = vld [vmem:[#allocation2 + $0x2a0] sm:$0xff]  ;;  %735 = vmatpush2.msra.mxu0 %v494_v38  ;;  %v453_v20 = vld [vmem:[#allocation2 + $0x178] sm:$0xff] }
  0x6a   : > { %v619_v41 = vld [vmem:[#allocation2 + $0x6a8] sm:$0xff]  ;;  %v618_v43 = vld [vmem:[#allocation2 + $0x6a0] sm:$0xff]  ;;  %806 = vmatpush2.msra.mxu1 %v622_v39  ;;  %736 = vmatprep.subr.mxu0 %v491_v40  ;;  %v581_v21 = vld [vmem:[#allocation2 + $0x578] sm:$0xff] }
  0x6b   : > { %v487_v44 = vld [vmem:[#allocation2 + $0x288] sm:$0xff]  ;;  %807 = vmatprep.subr.mxu1 %v619_v41  ;;  %v486_v46 = vld [vmem:[#allocation2 + $0x280] sm:$0xff]  ;;  %737 = vmatpush2.msra.mxu0 %v490_v42  ;;  %v452_v22 = vld [vmem:[#allocation2 + $0x170] sm:$0xff] }
  0x6c   : > { %v615_v45 = vld [vmem:[#allocation2 + $0x688] sm:$0xff]  ;;  %v614_v47 = vld [vmem:[#allocation2 + $0x680] sm:$0xff]  ;;  %808 = vmatpush2.msra.mxu1 %v618_v43  ;;  %738 = vmatprep.subr.mxu0 %v487_v44  ;;  %v580_v23 = vld [vmem:[#allocation2 + $0x570] sm:$0xff] }
  0x6d   : > { %v483_v48 = vld [vmem:[#allocation2 + $0x268] sm:$0xff]  ;;  %809 = vmatprep.subr.mxu1 %v615_v45  ;;  %v482_v50 = vld [vmem:[#allocation2 + $0x260] sm:$0xff]  ;;  %739 = vmatpush2.msra.mxu0 %v486_v46  ;;  %v449_v24 = vld [vmem:[#allocation2 + $0x158] sm:$0xff] }
  0x6e   : > { %v611_v49 = vld [vmem:[#allocation2 + $0x668] sm:$0xff]  ;;  %v610_v51 = vld [vmem:[#allocation2 + $0x660] sm:$0xff]  ;;  %810 = vmatpush2.msra.mxu1 %v614_v47  ;;  %740 = vmatprep.subr.mxu0 %v483_v48  ;;  %v577_v25 = vld [vmem:[#allocation2 + $0x558] sm:$0xff] }
  0x6f   : > { %v479_v52 = vld [vmem:[#allocation2 + $0x248] sm:$0xff]  ;;  %811 = vmatprep.subr.mxu1 %v611_v49  ;;  %v478_v54 = vld [vmem:[#allocation2 + $0x240] sm:$0xff]  ;;  %741 = vmatpush2.msra.mxu0 %v482_v50  ;;  %v448_v26 = vld [vmem:[#allocation2 + $0x150] sm:$0xff] }
  0x70   : > { %v607_v53 = vld [vmem:[#allocation2 + $0x648] sm:$0xff]  ;;  %v606_v55 = vld [vmem:[#allocation2 + $0x640] sm:$0xff]  ;;  %812 = vmatpush2.msra.mxu1 %v610_v51  ;;  %742 = vmatprep.subr.mxu0 %v479_v52  ;;  %v576_v27 = vld [vmem:[#allocation2 + $0x550] sm:$0xff] }
  0x71   : > { %v475_v56 = vld [vmem:[#allocation2 + $0x228] sm:$0xff]  ;;  %813 = vmatprep.subr.mxu1 %v607_v53  ;;  %v474_v58 = vld [vmem:[#allocation2 + $0x220] sm:$0xff]  ;;  %743 = vmatpush2.msra.mxu0 %v478_v54  ;;  %v445_v28 = vld [vmem:[#allocation2 + $0x138] sm:$0xff] }
  0x72   : > { %v603_v57 = vld [vmem:[#allocation2 + $0x628] sm:$0xff]  ;;  %v602_v59 = vld [vmem:[#allocation2 + $0x620] sm:$0xff]  ;;  %814 = vmatpush2.msra.mxu1 %v606_v55  ;;  %744 = vmatprep.subr.mxu0 %v475_v56  ;;  %v573_v29 = vld [vmem:[#allocation2 + $0x538] sm:$0xff] }
  0x73   : > { %v471_v60 = vld [vmem:[#allocation2 + $0x208] sm:$0xff]  ;;  %815 = vmatprep.subr.mxu1 %v603_v57  ;;  %v470_v62 = vld [vmem:[#allocation2 + $0x200] sm:$0xff]  ;;  %745 = vmatpush2.msra.mxu0 %v474_v58  ;;  %v444_v30 = vld [vmem:[#allocation2 + $0x130] sm:$0xff] }
  0x74   : > { %v599_v61 = vld [vmem:[#allocation2 + $0x608] sm:$0xff]  ;;  %816 = vmatpush2.msra.mxu1 %v602_v59  ;;  %v598_v0 = vld [vmem:[#allocation2 + $0x600] sm:$0xff]  ;;  %746 = vmatprep.subr.mxu0 %v471_v60  ;;  %v572_v31 = vld [vmem:[#allocation2 + $0x530] sm:$0xff] }
  0x75   : > { %v2502_v63 = vld [vmem:[%s2499_s21 + $0x8] sm:$0xff]  ;;  %v2505_v1 = vld [vmem:[%s2499_s21] sm:$0xff]  ;;  %817 = vmatprep.subr.mxu1 %v599_v61  ;;  %747 = vmatpush2.msra.mxu0 %v470_v62  ;;  %v441_v32 = vld [vmem:[#allocation2 + $0x118] sm:$0xff] }
  0x76   : > { %748 = vmatprep.mubr.f32.mxu0 %v2502_v63  ;;  %818 = vmatpush2.msra.mxu1 %v598_v0  ;;  %v569_v33 = vld [vmem:[#allocation2 + $0x518] sm:$0xff]  ;;  %v440_v34 = vld [vmem:[#allocation2 + $0x110] sm:$0xff] }
  0x77   : > { %749 = vmatmul.mubr.f32.vlgmr.msra.gmra.mxu0 %v2505_v1  ;;  %819 = vmatprep.mubr.f32.mxu1 %v2508_v2  ;;  %v568_v35 = vld [vmem:[#allocation2 + $0x510] sm:$0xff]  ;;  %v437_v36 = vld [vmem:[#allocation2 + $0xf8] sm:$0xff] }
  0x78   : > { %826 = vmatprep.subr.mxu0 %v469_v3  ;;  %897 = vmatprep.subr.mxu1 %v597_v4  ;;  %v565_v37 = vld [vmem:[#allocation2 + $0x4f8] sm:$0xff]  ;;  %v436_v38 = vld [vmem:[#allocation2 + $0xf0] sm:$0xff] }
  0x79   : > { %820 = vmatmul.mubr.f32.vlgmr.msra.gmra.mxu1 %v2512_v5  ;;  %827 = vmatpush1.msra.mxu0 %v468_v6  ;;  %v564_v39 = vld [vmem:[#allocation2 + $0x4f0] sm:$0xff]  ;;  %v433_v40 = vld [vmem:[#allocation2 + $0xd8] sm:$0xff] }
  0x7a   : > { %898 = vmatpush1.msra.mxu1 %v596_v7  ;;  %828 = vmatprep.subr.mxu0 %v465_v8  ;;  %v561_v41 = vld [vmem:[#allocation2 + $0x4d8] sm:$0xff]  ;;  %v432_v42 = vld [vmem:[#allocation2 + $0xd0] sm:$0xff] }
  0x7b   : > { %899 = vmatprep.subr.mxu1 %v593_v9  ;;  %829 = vmatpush1.msra.mxu0 %v464_v10  ;;  %v560_v43 = vld [vmem:[#allocation2 + $0x4d0] sm:$0xff]  ;;  %v429_v44 = vld [vmem:[#allocation2 + $0xb8] sm:$0xff] }
  0x7c   : > { %900 = vmatpush1.msra.mxu1 %v592_v11  ;;  %830 = vmatprep.subr.mxu0 %v461_v12  ;;  %v557_v45 = vld [vmem:[#allocation2 + $0x4b8] sm:$0xff]  ;;  %v428_v46 = vld [vmem:[#allocation2 + $0xb0] sm:$0xff] }
  0x7d   : > { %901 = vmatprep.subr.mxu1 %v589_v13  ;;  %831 = vmatpush1.msra.mxu0 %v460_v14  ;;  %v556_v47 = vld [vmem:[#allocation2 + $0x4b0] sm:$0xff]  ;;  %v425_v48 = vld [vmem:[#allocation2 + $0x98] sm:$0xff] }
  0x7e   : > { %902 = vmatpush1.msra.mxu1 %v588_v15  ;;  %832 = vmatprep.subr.mxu0 %v457_v16  ;;  %v553_v49 = vld [vmem:[#allocation2 + $0x498] sm:$0xff]  ;;  %v424_v50 = vld [vmem:[#allocation2 + $0x90] sm:$0xff] }
  0x7f   : > { %903 = vmatprep.subr.mxu1 %v585_v17  ;;  %833 = vmatpush1.msra.mxu0 %v456_v18  ;;  %v552_v51 = vld [vmem:[#allocation2 + $0x490] sm:$0xff]  ;;  %v421_v52 = vld [vmem:[#allocation2 + $0x78] sm:$0xff] }
  0x80   : > { %904 = vmatpush1.msra.mxu1 %v584_v19  ;;  %834 = vmatprep.subr.mxu0 %v453_v20  ;;  %v549_v53 = vld [vmem:[#allocation2 + $0x478] sm:$0xff]  ;;  %v420_v54 = vld [vmem:[#allocation2 + $0x70] sm:$0xff] }
  0x81   : > { %905 = vmatprep.subr.mxu1 %v581_v21  ;;  %835 = vmatpush1.msra.mxu0 %v452_v22  ;;  %v548_v55 = vld [vmem:[#allocation2 + $0x470] sm:$0xff]  ;;  %v417_v56 = vld [vmem:[#allocation2 + $0x58] sm:$0xff] }
  0x82   : > { %906 = vmatpush1.msra.mxu1 %v580_v23  ;;  %836 = vmatprep.subr.mxu0 %v449_v24  ;;  %v545_v57 = vld [vmem:[#allocation2 + $0x458] sm:$0xff]  ;;  %v416_v58 = vld [vmem:[#allocation2 + $0x50] sm:$0xff] }
  0x83   : > { %907 = vmatprep.subr.mxu1 %v577_v25  ;;  %837 = vmatpush1.msra.mxu0 %v448_v26  ;;  %v544_v59 = vld [vmem:[#allocation2 + $0x450] sm:$0xff]  ;;  %v413_v60 = vld [vmem:[#allocation2 + $0x38] sm:$0xff] }
  0x84   : > { %908 = vmatpush1.msra.mxu1 %v576_v27  ;;  %838 = vmatprep.subr.mxu0 %v445_v28  ;;  %v541_v61 = vld [vmem:[#allocation2 + $0x438] sm:$0xff]  ;;  %v412_v62 = vld [vmem:[#allocation2 + $0x30] sm:$0xff] }
  0x85   : > { %909 = vmatprep.subr.mxu1 %v573_v29  ;;  %839 = vmatpush1.msra.mxu0 %v444_v30  ;;  %v540_v0 = vld [vmem:[#allocation2 + $0x430] sm:$0xff]  ;;  %v409_v3 = vld [vmem:[#allocation2 + $0x18] sm:$0xff] }
  0x86   : > { %910 = vmatpush1.msra.mxu1 %v572_v31  ;;  %840 = vmatprep.subr.mxu0 %v441_v32  ;;  %v537_v4 = vld [vmem:[#allocation2 + $0x418] sm:$0xff]  ;;  %v408_v6 = vld [vmem:[#allocation2 + $0x10] sm:$0xff] }
  0x87   : > { %911 = vmatprep.subr.mxu1 %v569_v33  ;;  %841 = vmatpush1.msra.mxu0 %v440_v34  ;;  %v536_v7 = vld [vmem:[#allocation2 + $0x410] sm:$0xff]  ;;  %v533_v8 = vld [vmem:[#allocation2 + $0x3f8] sm:$0xff] }
  0x88   : > { %912 = vmatpush1.msra.mxu1 %v568_v35  ;;  %842 = vmatprep.subr.mxu0 %v437_v36  ;;  %v661_v9 = vld [vmem:[#allocation2 + $0x7f8] sm:$0xff]  ;;  %v532_v10 = vld [vmem:[#allocation2 + $0x3f0] sm:$0xff] }
  0x89   : > { %913 = vmatprep.subr.mxu1 %v565_v37  ;;  %843 = vmatpush1.msra.mxu0 %v436_v38  ;;  %v660_v11 = vld [vmem:[#allocation2 + $0x7f0] sm:$0xff]  ;;  %v529_v12 = vld [vmem:[#allocation2 + $0x3d8] sm:$0xff] }
  0x8a   : > { %914 = vmatpush1.msra.mxu1 %v564_v39  ;;  %844 = vmatprep.subr.mxu0 %v433_v40  ;;  %v657_v13 = vld [vmem:[#allocation2 + $0x7d8] sm:$0xff]  ;;  %v528_v14 = vld [vmem:[#allocation2 + $0x3d0] sm:$0xff] }
  0x8b   : > { %915 = vmatprep.subr.mxu1 %v561_v41  ;;  %845 = vmatpush1.msra.mxu0 %v432_v42  ;;  %v656_v15 = vld [vmem:[#allocation2 + $0x7d0] sm:$0xff]  ;;  %v525_v16 = vld [vmem:[#allocation2 + $0x3b8] sm:$0xff] }
  0x8c   : > { %916 = vmatpush1.msra.mxu1 %v560_v43  ;;  %846 = vmatprep.subr.mxu0 %v429_v44  ;;  %v653_v17 = vld [vmem:[#allocation2 + $0x7b8] sm:$0xff]  ;;  %v524_v18 = vld [vmem:[#allocation2 + $0x3b0] sm:$0xff] }
  0x8d   : > { %917 = vmatprep.subr.mxu1 %v557_v45  ;;  %847 = vmatpush1.msra.mxu0 %v428_v46  ;;  %v652_v19 = vld [vmem:[#allocation2 + $0x7b0] sm:$0xff]  ;;  %v521_v20 = vld [vmem:[#allocation2 + $0x398] sm:$0xff] }
  0x8e   : > { %918 = vmatpush1.msra.mxu1 %v556_v47  ;;  %848 = vmatprep.subr.mxu0 %v425_v48  ;;  %v649_v21 = vld [vmem:[#allocation2 + $0x798] sm:$0xff]  ;;  %v520_v22 = vld [vmem:[#allocation2 + $0x390] sm:$0xff] }
  0x8f   : > { %919 = vmatprep.subr.mxu1 %v553_v49  ;;  %849 = vmatpush1.msra.mxu0 %v424_v50  ;;  %v648_v23 = vld [vmem:[#allocation2 + $0x790] sm:$0xff]  ;;  %v517_v24 = vld [vmem:[#allocation2 + $0x378] sm:$0xff] }
  0x90   : > { %920 = vmatpush1.msra.mxu1 %v552_v51  ;;  %850 = vmatprep.subr.mxu0 %v421_v52  ;;  %v645_v25 = vld [vmem:[#allocation2 + $0x778] sm:$0xff]  ;;  %v516_v26 = vld [vmem:[#allocation2 + $0x370] sm:$0xff] }
  0x91   : > { %921 = vmatprep.subr.mxu1 %v549_v53  ;;  %851 = vmatpush1.msra.mxu0 %v420_v54  ;;  %v644_v27 = vld [vmem:[#allocation2 + $0x770] sm:$0xff]  ;;  %v513_v28 = vld [vmem:[#allocation2 + $0x358] sm:$0xff] }
  0x92   : > { %922 = vmatpush1.msra.mxu1 %v548_v55  ;;  %852 = vmatprep.subr.mxu0 %v417_v56  ;;  %v641_v29 = vld [vmem:[#allocation2 + $0x758] sm:$0xff]  ;;  %v512_v30 = vld [vmem:[#allocation2 + $0x350] sm:$0xff] }
  0x93   : > { %923 = vmatprep.subr.mxu1 %v545_v57  ;;  %853 = vmatpush1.msra.mxu0 %v416_v58  ;;  %v640_v31 = vld [vmem:[#allocation2 + $0x750] sm:$0xff]  ;;  %v509_v32 = vld [vmem:[#allocation2 + $0x338] sm:$0xff] }
  0x94   : > { %924 = vmatpush1.msra.mxu1 %v544_v59  ;;  %854 = vmatprep.subr.mxu0 %v413_v60  ;;  %v637_v33 = vld [vmem:[#allocation2 + $0x738] sm:$0xff]  ;;  %v508_v34 = vld [vmem:[#allocation2 + $0x330] sm:$0xff] }
  0x95   : > { %925 = vmatprep.subr.mxu1 %v541_v61  ;;  %855 = vmatpush1.msra.mxu0 %v412_v62  ;;  %v636_v35 = vld [vmem:[#allocation2 + $0x730] sm:$0xff]  ;;  %v505_v36 = vld [vmem:[#allocation2 + $0x318] sm:$0xff] }
  0x96   : > { %926 = vmatpush1.msra.mxu1 %v540_v0  ;;  %856 = vmatprep.subr.mxu0 %v409_v3  ;;  %v633_v37 = vld [vmem:[#allocation2 + $0x718] sm:$0xff]  ;;  %v504_v38 = vld [vmem:[#allocation2 + $0x310] sm:$0xff] }
  0x97   : > { %927 = vmatprep.subr.mxu1 %v537_v4  ;;  %857 = vmatpush1.msra.mxu0 %v408_v6  ;;  %v632_v39 = vld [vmem:[#allocation2 + $0x710] sm:$0xff]  ;;  %v501_v40 = vld [vmem:[#allocation2 + $0x2f8] sm:$0xff] }
  0x98   : > { %928 = vmatpush1.msra.mxu1 %v536_v7  ;;  %858 = vmatprep.subr.mxu0 %v533_v8  ;;  %v629_v41 = vld [vmem:[#allocation2 + $0x6f8] sm:$0xff]  ;;  %v500_v42 = vld [vmem:[#allocation2 + $0x2f0] sm:$0xff] }
  0x99   : > { %929 = vmatprep.subr.mxu1 %v661_v9  ;;  %859 = vmatpush2.msra.mxu0 %v532_v10  ;;  %v628_v43 = vld [vmem:[#allocation2 + $0x6f0] sm:$0xff]  ;;  %v497_v44 = vld [vmem:[#allocation2 + $0x2d8] sm:$0xff] }
  0x9a   : > { %930 = vmatpush2.msra.mxu1 %v660_v11  ;;  %860 = vmatprep.subr.mxu0 %v529_v12  ;;  %v625_v45 = vld [vmem:[#allocation2 + $0x6d8] sm:$0xff]  ;;  %v496_v46 = vld [vmem:[#allocation2 + $0x2d0] sm:$0xff]  ;;  %v1033_v12 = vld [vmem:[#allocation4 + $0x1e8] sm:$0xff] }
  0x9b   : > { %931 = vmatprep.subr.mxu1 %v657_v13  ;;  %861 = vmatpush2.msra.mxu0 %v528_v14  ;;  %v624_v47 = vld [vmem:[#allocation2 + $0x6d0] sm:$0xff]  ;;  %v493_v48 = vld [vmem:[#allocation2 + $0x2b8] sm:$0xff]  ;;  %v1032_v13 = vld [vmem:[#allocation4 + $0x1e0] sm:$0xff] }
  0x9c   : > { %932 = vmatpush2.msra.mxu1 %v656_v15  ;;  %862 = vmatprep.subr.mxu0 %v525_v16  ;;  %v621_v49 = vld [vmem:[#allocation2 + $0x6b8] sm:$0xff]  ;;  %v492_v50 = vld [vmem:[#allocation2 + $0x2b0] sm:$0xff]  ;;  %v1029_v14 = vld [vmem:[#allocation4 + $0x1c8] sm:$0xff] }
  0x9d   : > { %933 = vmatprep.subr.mxu1 %v653_v17  ;;  %863 = vmatpush2.msra.mxu0 %v524_v18  ;;  %v620_v51 = vld [vmem:[#allocation2 + $0x6b0] sm:$0xff]  ;;  %v489_v52 = vld [vmem:[#allocation2 + $0x298] sm:$0xff]  ;;  %v1028_v15 = vld [vmem:[#allocation4 + $0x1c0] sm:$0xff] }
  0x9e   : > { %934 = vmatpush2.msra.mxu1 %v652_v19  ;;  %864 = vmatprep.subr.mxu0 %v521_v20  ;;  %v617_v53 = vld [vmem:[#allocation2 + $0x698] sm:$0xff]  ;;  %v488_v54 = vld [vmem:[#allocation2 + $0x290] sm:$0xff]  ;;  %v1025_v16 = vld [vmem:[#allocation4 + $0x1a8] sm:$0xff] }
  0x9f   : > { %935 = vmatprep.subr.mxu1 %v649_v21  ;;  %865 = vmatpush2.msra.mxu0 %v520_v22  ;;  %v616_v55 = vld [vmem:[#allocation2 + $0x690] sm:$0xff]  ;;  %v485_v56 = vld [vmem:[#allocation2 + $0x278] sm:$0xff]  ;;  %v1024_v17 = vld [vmem:[#allocation4 + $0x1a0] sm:$0xff] }
  0xa0   : > { %936 = vmatpush2.msra.mxu1 %v648_v23  ;;  %866 = vmatprep.subr.mxu0 %v517_v24  ;;  %v613_v57 = vld [vmem:[#allocation2 + $0x678] sm:$0xff]  ;;  %v484_v58 = vld [vmem:[#allocation2 + $0x270] sm:$0xff]  ;;  %v1021_v18 = vld [vmem:[#allocation4 + $0x188] sm:$0xff] }
  0xa1   : > { %937 = vmatprep.subr.mxu1 %v645_v25  ;;  %867 = vmatpush2.msra.mxu0 %v516_v26  ;;  %v612_v59 = vld [vmem:[#allocation2 + $0x670] sm:$0xff]  ;;  %v481_v60 = vld [vmem:[#allocation2 + $0x258] sm:$0xff]  ;;  %v1017_v19 = vld [vmem:[#allocation4 + $0x168] sm:$0xff] }
  0xa2   : > { %938 = vmatpush2.msra.mxu1 %v644_v27  ;;  %868 = vmatprep.subr.mxu0 %v513_v28  ;;  %v609_v61 = vld [vmem:[#allocation2 + $0x658] sm:$0xff]  ;;  %v480_v62 = vld [vmem:[#allocation2 + $0x250] sm:$0xff]  ;;  %v1013_v20 = vld [vmem:[#allocation4 + $0x148] sm:$0xff] }
  0xa3   : > { %939 = vmatprep.subr.mxu1 %v641_v29  ;;  %869 = vmatpush2.msra.mxu0 %v512_v30  ;;  %v608_v0 = vld [vmem:[#allocation2 + $0x650] sm:$0xff]  ;;  %v477_v3 = vld [vmem:[#allocation2 + $0x238] sm:$0xff]  ;;  %v1008_v21 = vld [vmem:[#allocation4 + $0x120] sm:$0xff] }
  0xa4   : > { %940 = vmatpush2.msra.mxu1 %v640_v31  ;;  %870 = vmatprep.subr.mxu0 %v509_v32  ;;  %v605_v4 = vld [vmem:[#allocation2 + $0x638] sm:$0xff]  ;;  %v476_v6 = vld [vmem:[#allocation2 + $0x230] sm:$0xff]  ;;  %v1005_v22 = vld [vmem:[#allocation4 + $0x108] sm:$0xff] }
  0xa5   : > { %941 = vmatprep.subr.mxu1 %v637_v33  ;;  %871 = vmatpush2.msra.mxu0 %v508_v34  ;;  %v604_v7 = vld [vmem:[#allocation2 + $0x630] sm:$0xff]  ;;  %v473_v8 = vld [vmem:[#allocation2 + $0x218] sm:$0xff]  ;;  %v1004_v23 = vld [vmem:[#allocation4 + $0x100] sm:$0xff] }
  0xa6   : > { %942 = vmatpush2.msra.mxu1 %v636_v35  ;;  %872 = vmatprep.subr.mxu0 %v505_v36  ;;  %v601_v9 = vld [vmem:[#allocation2 + $0x618] sm:$0xff]  ;;  %v472_v10 = vld [vmem:[#allocation2 + $0x210] sm:$0xff]  ;;  %v1001_v24 = vld [vmem:[#allocation4 + $0xe8] sm:$0xff] }
  0xa7   : > { %943 = vmatprep.subr.mxu1 %v633_v37  ;;  %873 = vmatpush2.msra.mxu0 %v504_v38  ;;  %v600_v11 = vld [vmem:[#allocation2 + $0x610] sm:$0xff]  ;;  %v1000_v25 = vld [vmem:[#allocation4 + $0xe0] sm:$0xff]  ;;  %v997_v26 = vld [vmem:[#allocation4 + $0xc8] sm:$0xff] }
  0xa8   : > { %944 = vmatpush2.msra.mxu1 %v632_v39  ;;  %874 = vmatprep.subr.mxu0 %v501_v40  ;;  %v996_v27 = vld [vmem:[#allocation4 + $0xc0] sm:$0xff]  ;;  %v993_v28 = vld [vmem:[#allocation4 + $0xa8] sm:$0xff] }
  0xa9   : > { %945 = vmatprep.subr.mxu1 %v629_v41  ;;  %875 = vmatpush2.msra.mxu0 %v500_v42  ;;  %v1161_v29 = vld [vmem:[#allocation4 + $0x5e8] sm:$0xff]  ;;  %v992_v30 = vld [vmem:[#allocation4 + $0xa0] sm:$0xff] }
  0xaa   : > { %946 = vmatpush2.msra.mxu1 %v628_v43  ;;  %876 = vmatprep.subr.mxu0 %v497_v44  ;;  %v1160_v31 = vld [vmem:[#allocation4 + $0x5e0] sm:$0xff]  ;;  %v989_v32 = vld [vmem:[#allocation4 + $0x88] sm:$0xff] }
  0xab   : > { %947 = vmatprep.subr.mxu1 %v625_v45  ;;  %877 = vmatpush2.msra.mxu0 %v496_v46  ;;  %v1157_v33 = vld [vmem:[#allocation4 + $0x5c8] sm:$0xff]  ;;  %v988_v34 = vld [vmem:[#allocation4 + $0x80] sm:$0xff] }
  0xac   : > { %948 = vmatpush2.msra.mxu1 %v624_v47  ;;  %878 = vmatprep.subr.mxu0 %v493_v48  ;;  %v1156_v35 = vld [vmem:[#allocation4 + $0x5c0] sm:$0xff]  ;;  %v985_v36 = vld [vmem:[#allocation4 + $0x68] sm:$0xff] }
  0xad   : > { %949 = vmatprep.subr.mxu1 %v621_v49  ;;  %879 = vmatpush2.msra.mxu0 %v492_v50  ;;  %v1153_v37 = vld [vmem:[#allocation4 + $0x5a8] sm:$0xff]  ;;  %v984_v38 = vld [vmem:[#allocation4 + $0x60] sm:$0xff] }
  0xae   : > { %950 = vmatpush2.msra.mxu1 %v620_v51  ;;  %880 = vmatprep.subr.mxu0 %v489_v52  ;;  %v1152_v39 = vld [vmem:[#allocation4 + $0x5a0] sm:$0xff]  ;;  %v981_v40 = vld [vmem:[#allocation4 + $0x48] sm:$0xff] }
  0xaf   : > { %951 = vmatprep.subr.mxu1 %v617_v53  ;;  %881 = vmatpush2.msra.mxu0 %v488_v54  ;;  %v1149_v41 = vld [vmem:[#allocation4 + $0x588] sm:$0xff]  ;;  %v980_v42 = vld [vmem:[#allocation4 + $0x40] sm:$0xff] }
  0xb0   : > { %952 = vmatpush2.msra.mxu1 %v616_v55  ;;  %882 = vmatprep.subr.mxu0 %v485_v56  ;;  %v1148_v43 = vld [vmem:[#allocation4 + $0x580] sm:$0xff]  ;;  %v977_v44 = vld [vmem:[#allocation4 + $0x28] sm:$0xff] }
  0xb1   : > { %953 = vmatprep.subr.mxu1 %v613_v57  ;;  %883 = vmatpush2.msra.mxu0 %v484_v58  ;;  %v1145_v45 = vld [vmem:[#allocation4 + $0x568] sm:$0xff]  ;;  %v976_v46 = vld [vmem:[#allocation4 + $0x20] sm:$0xff] }
  0xb2   : > { %954 = vmatpush2.msra.mxu1 %v612_v59  ;;  %884 = vmatprep.subr.mxu0 %v481_v60  ;;  %v1144_v47 = vld [vmem:[#allocation4 + $0x560] sm:$0xff]  ;;  %v973_v48 = vld [vmem:[#allocation4 + $0x8] sm:$0xff] }
  0xb3   : > { %955 = vmatprep.subr.mxu1 %v609_v61  ;;  %885 = vmatpush2.msra.mxu0 %v480_v62  ;;  %v1141_v49 = vld [vmem:[#allocation4 + $0x548] sm:$0xff]  ;;  %v972_v50 = vld [vmem:[#allocation4] sm:$0xff] }
  0xb4   : > { %956 = vmatpush2.msra.mxu1 %v608_v0  ;;  %886 = vmatprep.subr.mxu0 %v477_v3  ;;  %v1140_v51 = vld [vmem:[#allocation4 + $0x540] sm:$0xff]  ;;  %v1097_v52 = vld [vmem:[#allocation4 + $0x3e8] sm:$0xff] }
  0xb5   : > { %957 = vmatprep.subr.mxu1 %v605_v4  ;;  %887 = vmatpush2.msra.mxu0 %v476_v6  ;;  %v1137_v53 = vld [vmem:[#allocation4 + $0x528] sm:$0xff]  ;;  %v1096_v54 = vld [vmem:[#allocation4 + $0x3e0] sm:$0xff] }
  0xb6   : > { %958 = vmatpush2.msra.mxu1 %v604_v7  ;;  %888 = vmatprep.subr.mxu0 %v473_v8  ;;  %v1136_v55 = vld [vmem:[#allocation4 + $0x520] sm:$0xff]  ;;  %v1093_v56 = vld [vmem:[#allocation4 + $0x3c8] sm:$0xff] }
  0xb7   : > { %959 = vmatprep.subr.mxu1 %v601_v9  ;;  %889 = vmatpush2.msra.mxu0 %v472_v10  ;;  %v1133_v57 = vld [vmem:[#allocation4 + $0x508] sm:$0xff]  ;;  %v1092_v58 = vld [vmem:[#allocation4 + $0x3c0] sm:$0xff] }
  0xb8   : > { %890 = vmatprep.mubr.f32.mxu0 %v2502_v63  ;;  %960 = vmatpush2.msra.mxu1 %v600_v11  ;;  %v1020_v63 = vld [vmem:[#allocation4 + $0x180] sm:$0xff]  ;;  %v1089_v60 = vld [vmem:[#allocation4 + $0x3a8] sm:$0xff] }
  0xb9   : > { %961 = vmatprep.mubr.f32.mxu1 %v2508_v2  ;;  %891 = vmatmul.mubr.f32.vlgmr.msra.gmra.mxu0 %v2505_v1  ;;  %v1016_v2 = vld [vmem:[#allocation4 + $0x160] sm:$0xff]  ;;  %v1129_v61 = vld [vmem:[#allocation4 + $0x4e8] sm:$0xff] }
  0xba   : > { %962 = vmatmul.mubr.f32.vlgmr.msra.gmra.mxu1 %v2512_v5  ;;  %1228 = vmatprep.subr.mxu0 %v1033_v12  ;;  %v1012_v1 = vld [vmem:[#allocation4 + $0x140] sm:$0xff]  ;;  %v1009_v5 = vld [vmem:[#allocation4 + $0x128] sm:$0xff] }
  0xbb   : > { %1229 = vmatpush1.msra.mxu0 %v1032_v13  ;;  %1299 = vmatprep.subr.mxu1 %v1161_v29  ;;  %v1132_v59 = vld [vmem:[#allocation4 + $0x500] sm:$0xff]  ;;  %v1085_v3 = vld [vmem:[#allocation4 + $0x388] sm:$0xff] }
  0xbc   : > { %1230 = vmatprep.subr.mxu0 %v1029_v14  ;;  %1300 = vmatpush1.msra.mxu1 %v1160_v31  ;;  %v1088_v62 = vld [vmem:[#allocation4 + $0x3a0] sm:$0xff]  ;;  %v1125_v4 = vld [vmem:[#allocation4 + $0x4c8] sm:$0xff] }
  0xbd   : > { %1231 = vmatpush1.msra.mxu0 %v1028_v15  ;;  %1301 = vmatprep.subr.mxu1 %v1157_v33  ;;  %v1128_v0 = vld [vmem:[#allocation4 + $0x4e0] sm:$0xff]  ;;  %v1081_v8 = vld [vmem:[#allocation4 + $0x368] sm:$0xff] }
  0xbe   : > { %1232 = vmatprep.subr.mxu0 %v1025_v16  ;;  %1302 = vmatpush1.msra.mxu1 %v1156_v35  ;;  %v1084_v6 = vld [vmem:[#allocation4 + $0x380] sm:$0xff]  ;;  %v1121_v9 = vld [vmem:[#allocation4 + $0x4a8] sm:$0xff] }
  0xbf   : > { %1233 = vmatpush1.msra.mxu0 %v1024_v17  ;;  %1303 = vmatprep.subr.mxu1 %v1153_v37  ;;  %v1124_v7 = vld [vmem:[#allocation4 + $0x4c0] sm:$0xff]  ;;  %v1077_v12 = vld [vmem:[#allocation4 + $0x348] sm:$0xff] }
  0xc0   : > { %1234 = vmatprep.subr.mxu0 %v1021_v18  ;;  %1304 = vmatpush1.msra.mxu1 %v1152_v39  ;;  %v1080_v10 = vld [vmem:[#allocation4 + $0x360] sm:$0xff]  ;;  %v1117_v13 = vld [vmem:[#allocation4 + $0x488] sm:$0xff] }
  0xc1   : > { %1235 = vmatpush1.msra.mxu0 %v1020_v63  ;;  %1305 = vmatprep.subr.mxu1 %v1149_v41  ;;  %v1120_v11 = vld [vmem:[#allocation4 + $0x4a0] sm:$0xff]  ;;  %v1073_v16 = vld [vmem:[#allocation4 + $0x328] sm:$0xff] }
  0xc2   : > { %1236 = vmatprep.subr.mxu0 %v1017_v19  ;;  %1306 = vmatpush1.msra.mxu1 %v1148_v43  ;;  %v1076_v14 = vld [vmem:[#allocation4 + $0x340] sm:$0xff]  ;;  %v1113_v17 = vld [vmem:[#allocation4 + $0x468] sm:$0xff] }
  0xc3   : > { %1237 = vmatpush1.msra.mxu0 %v1016_v2  ;;  %1307 = vmatprep.subr.mxu1 %v1145_v45  ;;  %v1116_v15 = vld [vmem:[#allocation4 + $0x480] sm:$0xff]  ;;  %v1069_v19 = vld [vmem:[#allocation4 + $0x308] sm:$0xff] }
  0xc4   : > { %1238 = vmatprep.subr.mxu0 %v1013_v20  ;;  %1308 = vmatpush1.msra.mxu1 %v1144_v47  ;;  %v1072_v18 = vld [vmem:[#allocation4 + $0x320] sm:$0xff]  ;;  %v1109_v2 = vld [vmem:[#allocation4 + $0x448] sm:$0xff] }
  0xc5   : > { %1239 = vmatpush1.msra.mxu0 %v1012_v1  ;;  %1309 = vmatprep.subr.mxu1 %v1141_v49  ;;  %v1112_v63 = vld [vmem:[#allocation4 + $0x460] sm:$0xff]  ;;  %v1225_v29 = vld [vmem:[#allocation4 + $0x7e8] sm:$0xff] }
  0xc6   : > { %1240 = vmatprep.subr.mxu0 %v1009_v5  ;;  %1310 = vmatpush1.msra.mxu1 %v1140_v51  ;;  %v1068_v20 = vld [vmem:[#allocation4 + $0x300] sm:$0xff]  ;;  %v1065_v5 = vld [vmem:[#allocation4 + $0x2e8] sm:$0xff]  ;;  %v1035_v51 = vld [vmem:[#allocation4 + $0x1f8] sm:$0xff] }
  0xc7   : > { %1241 = vmatpush1.msra.mxu0 %v1008_v21  ;;  %1311 = vmatprep.subr.mxu1 %v1137_v53  ;;  %v1108_v1 = vld [vmem:[#allocation4 + $0x440] sm:$0xff]  ;;  %v1105_v21 = vld [vmem:[#allocation4 + $0x428] sm:$0xff] }
  0xc8   : > { %1242 = vmatprep.subr.mxu0 %v1005_v22  ;;  %1312 = vmatpush1.msra.mxu1 %v1136_v55  ;;  %v1064_v22 = vld [vmem:[#allocation4 + $0x2e0] sm:$0xff]  ;;  %v1221_v33 = vld [vmem:[#allocation4 + $0x7c8] sm:$0xff] }
  0xc9   : > { %1243 = vmatpush1.msra.mxu0 %v1004_v23  ;;  %1313 = vmatprep.subr.mxu1 %v1133_v57  ;;  %v1104_v23 = vld [vmem:[#allocation4 + $0x420] sm:$0xff]  ;;  %v1217_v37 = vld [vmem:[#allocation4 + $0x7a8] sm:$0xff] }
  0xca   : > { %1244 = vmatprep.subr.mxu0 %v1001_v24  ;;  %1314 = vmatpush1.msra.mxu1 %v1132_v59  ;;  %v1061_v24 = vld [vmem:[#allocation4 + $0x2c8] sm:$0xff]  ;;  %v1224_v31 = vld [vmem:[#allocation4 + $0x7e0] sm:$0xff] }
  0xcb   : > { %1245 = vmatpush1.msra.mxu0 %v1000_v25  ;;  %1315 = vmatprep.subr.mxu1 %v1129_v61  ;;  %v1101_v25 = vld [vmem:[#allocation4 + $0x408] sm:$0xff]  ;;  %v1220_v35 = vld [vmem:[#allocation4 + $0x7c0] sm:$0xff] }
  0xcc   : > { %1246 = vmatprep.subr.mxu0 %v997_v26  ;;  %1316 = vmatpush1.msra.mxu1 %v1128_v0  ;;  %v1060_v26 = vld [vmem:[#allocation4 + $0x2c0] sm:$0xff]  ;;  %v1213_v41 = vld [vmem:[#allocation4 + $0x788] sm:$0xff] }
  0xcd   : > { %1247 = vmatpush1.msra.mxu0 %v996_v27  ;;  %1317 = vmatprep.subr.mxu1 %v1125_v4  ;;  %v1100_v27 = vld [vmem:[#allocation4 + $0x400] sm:$0xff]  ;;  %v1209_v45 = vld [vmem:[#allocation4 + $0x768] sm:$0xff] }
  0xce   : > { %1248 = vmatprep.subr.mxu0 %v993_v28  ;;  %1318 = vmatpush1.msra.mxu1 %v1124_v7  ;;  %v1057_v28 = vld [vmem:[#allocation4 + $0x2a8] sm:$0xff]  ;;  %v1216_v39 = vld [vmem:[#allocation4 + $0x7a0] sm:$0xff] }
  0xcf   : > { %1249 = vmatpush1.msra.mxu0 %v992_v30  ;;  %1319 = vmatprep.subr.mxu1 %v1121_v9  ;;  %v1056_v30 = vld [vmem:[#allocation4 + $0x2a0] sm:$0xff]  ;;  %v1205_v49 = vld [vmem:[#allocation4 + $0x748] sm:$0xff] }
  0xd0   : > { %1250 = vmatprep.subr.mxu0 %v989_v32  ;;  %1320 = vmatpush1.msra.mxu1 %v1120_v11  ;;  %v1053_v32 = vld [vmem:[#allocation4 + $0x288] sm:$0xff]  ;;  %v1212_v43 = vld [vmem:[#allocation4 + $0x780] sm:$0xff] }
  0xd1   : > { %1251 = vmatpush1.msra.mxu0 %v988_v34  ;;  %1321 = vmatprep.subr.mxu1 %v1117_v13  ;;  %v1052_v34 = vld [vmem:[#allocation4 + $0x280] sm:$0xff]  ;;  %v1201_v53 = vld [vmem:[#allocation4 + $0x728] sm:$0xff]  ;;  %v1163_v13 = vld [vmem:[#allocation4 + $0x5f8] sm:$0xff] }
  0xd2   : > { %1252 = vmatprep.subr.mxu0 %v985_v36  ;;  %1322 = vmatpush1.msra.mxu1 %v1116_v15  ;;  %v1049_v36 = vld [vmem:[#allocation4 + $0x268] sm:$0xff]  ;;  %v1208_v47 = vld [vmem:[#allocation4 + $0x760] sm:$0xff] }
  0xd3   : > { %1253 = vmatpush1.msra.mxu0 %v984_v38  ;;  %1323 = vmatprep.subr.mxu1 %v1113_v17  ;;  %v1048_v38 = vld [vmem:[#allocation4 + $0x260] sm:$0xff]  ;;  %v1197_v55 = vld [vmem:[#allocation4 + $0x708] sm:$0xff] }
  0xd4   : > { %1254 = vmatprep.subr.mxu0 %v981_v40  ;;  %1324 = vmatpush1.msra.mxu1 %v1112_v63  ;;  %v1045_v40 = vld [vmem:[#allocation4 + $0x248] sm:$0xff]  ;;  %v2527_v17 = vld [vmem:[%s2726_s2] sm:$0xf] }
  0xd5   : > { %1255 = vmatpush1.msra.mxu0 %v980_v42  ;;  %1325 = vmatprep.subr.mxu1 %v1109_v2  ;;  %v1044_v42 = vld [vmem:[#allocation4 + $0x240] sm:$0xff]  ;;  %v1193_v57 = vld [vmem:[#allocation4 + $0x6e8] sm:$0xff] }
  0xd6   : > { %1256 = vmatprep.subr.mxu0 %v977_v44  ;;  %1326 = vmatpush1.msra.mxu1 %v1108_v1  ;;  %v1041_v44 = vld [vmem:[#allocation4 + $0x228] sm:$0xff] }
  0xd7   : > { %1257 = vmatpush1.msra.mxu0 %v976_v46  ;;  %1327 = vmatprep.subr.mxu1 %v1105_v21  ;;  %v1040_v46 = vld [vmem:[#allocation4 + $0x220] sm:$0xff]  ;;  %v1189_v59 = vld [vmem:[#allocation4 + $0x6c8] sm:$0xff] }
  0xd8   : > { %1258 = vmatprep.subr.mxu0 %v973_v48  ;;  %1328 = vmatpush1.msra.mxu1 %v1104_v23  ;;  %v1037_v48 = vld [vmem:[#allocation4 + $0x208] sm:$0xff] }
  0xd9   : > { %1259 = vmatpush1.msra.mxu0 %v972_v50  ;;  %1329 = vmatprep.subr.mxu1 %v1101_v25  ;;  %v1036_v50 = vld [vmem:[#allocation4 + $0x200] sm:$0xff]  ;;  %v1185_v61 = vld [vmem:[#allocation4 + $0x6a8] sm:$0xff] }
  0xda   : > { %1260 = vmatprep.subr.mxu0 %v1097_v52  ;;  %1330 = vmatpush1.msra.mxu1 %v1100_v27  ;;  %v1204_v52 = vld [vmem:[#allocation4 + $0x740] sm:$0xff]  ;;  %v1181_v0 = vld [vmem:[#allocation4 + $0x688] sm:$0xff] }
  0xdb   : > { %1261 = vmatpush2.msra.mxu0 %v1096_v54  ;;  %1331 = vmatprep.subr.mxu1 %v1225_v29  ;;  %v1200_v54 = vld [vmem:[#allocation4 + $0x720] sm:$0xff]  ;;  %v1177_v4 = vld [vmem:[#allocation4 + $0x668] sm:$0xff]  ;;  %v1030_v29 = vld [vmem:[#allocation4 + $0x1d0] sm:$0xff] }
  0xdc   : > { %1262 = vmatprep.subr.mxu0 %v1093_v56  ;;  %1332 = vmatpush2.msra.mxu1 %v1224_v31  ;;  %v1196_v56 = vld [vmem:[#allocation4 + $0x700] sm:$0xff]  ;;  %v1173_v7 = vld [vmem:[#allocation4 + $0x648] sm:$0xff]  ;;  %v1026_v31 = vld [vmem:[#allocation4 + $0x1b0] sm:$0xff] }
  0xdd   : > { %1263 = vmatpush2.msra.mxu0 %v1092_v58  ;;  %1333 = vmatprep.subr.mxu1 %v1221_v33  ;;  %v1192_v58 = vld [vmem:[#allocation4 + $0x6e0] sm:$0xff]  ;;  %v1169_v9 = vld [vmem:[#allocation4 + $0x628] sm:$0xff]  ;;  %v1022_v33 = vld [vmem:[#allocation4 + $0x190] sm:$0xff] }
  0xde   : > { %1264 = vmatprep.subr.mxu0 %v1089_v60  ;;  %1334 = vmatpush2.msra.mxu1 %v1220_v35  ;;  %v1188_v60 = vld [vmem:[#allocation4 + $0x6c0] sm:$0xff]  ;;  %v1165_v11 = vld [vmem:[#allocation4 + $0x608] sm:$0xff]  ;;  %v1018_v35 = vld [vmem:[#allocation4 + $0x170] sm:$0xff] }
  0xdf   : > { %1265 = vmatpush2.msra.mxu0 %v1088_v62  ;;  %1335 = vmatprep.subr.mxu1 %v1217_v37  ;;  %v1184_v62 = vld [vmem:[#allocation4 + $0x6a0] sm:$0xff]  ;;  %v1014_v37 = vld [vmem:[#allocation4 + $0x150] sm:$0xff] }
  0xe0   : > { %1266 = vmatprep.subr.mxu0 %v1085_v3  ;;  %1336 = vmatpush2.msra.mxu1 %v1216_v39  ;;  %v1180_v3 = vld [vmem:[#allocation4 + $0x680] sm:$0xff]  ;;  %v1010_v39 = vld [vmem:[#allocation4 + $0x130] sm:$0xff] }
  0xe1   : > { %1267 = vmatpush2.msra.mxu0 %v1084_v6  ;;  %1337 = vmatprep.subr.mxu1 %v1213_v41  ;;  %v1176_v6 = vld [vmem:[#allocation4 + $0x660] sm:$0xff]  ;;  %v1006_v41 = vld [vmem:[#allocation4 + $0x110] sm:$0xff] }
  0xe2   : > { %1268 = vmatprep.subr.mxu0 %v1081_v8  ;;  %1338 = vmatpush2.msra.mxu1 %v1212_v43  ;;  %v1172_v8 = vld [vmem:[#allocation4 + $0x640] sm:$0xff]  ;;  %v1002_v43 = vld [vmem:[#allocation4 + $0xf0] sm:$0xff] }
  0xe3   : > { %1269 = vmatpush2.msra.mxu0 %v1080_v10  ;;  %1339 = vmatprep.subr.mxu1 %v1209_v45  ;;  %v1168_v10 = vld [vmem:[#allocation4 + $0x620] sm:$0xff]  ;;  %v998_v45 = vld [vmem:[#allocation4 + $0xd0] sm:$0xff] }
  0xe4   : > { %1270 = vmatprep.subr.mxu0 %v1077_v12  ;;  %1340 = vmatpush2.msra.mxu1 %v1208_v47  ;;  %v1164_v12 = vld [vmem:[#allocation4 + $0x600] sm:$0xff]  ;;  %v994_v47 = vld [vmem:[#allocation4 + $0xb0] sm:$0xff] }
  0xe5   : > { %1271 = vmatpush2.msra.mxu0 %v1076_v14  ;;  %1341 = vmatprep.subr.mxu1 %v1205_v49  ;;  %v664_v14 = vlaneseq  ;;  %v990_v49 = vld [vmem:[#allocation4 + $0x90] sm:$0xff] }
  0xe6   : > { %1272 = vmatprep.subr.mxu0 %v1073_v16  ;;  %1342 = vmatpush2.msra.mxu1 %v1204_v52  ;;  %v983_v52 = vld [vmem:[#allocation4 + $0x58] sm:$0xff] }
  0xe7   : > { %1273 = vmatpush2.msra.mxu0 %v1072_v18  ;;  %1343 = vmatprep.subr.mxu1 %v1201_v53  ;;  %v2521_v15 = vshrl.u32 %v664_v14, 7  ;;  %v982_v53 = vld [vmem:[#allocation4 + $0x50] sm:$0xff] }
  0xe8   : > { %1274 = vmatprep.subr.mxu0 %v1069_v19  ;;  %1344 = vmatpush2.msra.mxu1 %v1200_v54  ;;  %v979_v54 = vld [vmem:[#allocation4 + $0x38] sm:$0xff]  ;;  %v1074_v14 = vld [vmem:[#allocation4 + $0x330] sm:$0xff] }
  0xe9   : > { %1275 = vmatpush2.msra.mxu0 %v1068_v20  ;;  %1345 = vmatprep.subr.mxu1 %v1197_v55  ;;  %v666_v16 = vsub.s32 0, %v2521_v15  ;;  %v670_v18 = vsub.s32 1, %v2521_v15  ;;  %v978_v55 = vld [vmem:[#allocation4 + $0x30] sm:$0xff] }
  0xea   : > { %1276 = vmatprep.subr.mxu0 %v1065_v5  ;;  %1346 = vmatpush2.msra.mxu1 %v1196_v56  ;;  %v975_v56 = vld [vmem:[#allocation4 + $0x18] sm:$0xff] }
  0xeb   : > { %1277 = vmatpush2.msra.mxu0 %v1064_v22  ;;  %1347 = vmatprep.subr.mxu1 %v1193_v57  ;;  %v667_v63 = vrot.slane %v2527_v17, %v666_v16  ;;  %v671_v19 = vrot.slane %v2527_v17, %v670_v18  ;;  %v974_v57 = vld [vmem:[#allocation4 + $0x10] sm:$0xff] }
  0xec   : > { %1278 = vmatprep.subr.mxu0 %v1061_v24  ;;  %1348 = vmatpush2.msra.mxu1 %v1192_v58  ;;  %v1099_v58 = vld [vmem:[#allocation4 + $0x3f8] sm:$0xff] }
  0xed   : > { %1279 = vmatpush2.msra.mxu0 %v1060_v26  ;;  %1349 = vmatprep.subr.mxu1 %v1189_v59  ;;  %v1034_v26 = vld [vmem:[#allocation4 + $0x1f0] sm:$0xff] }
  0xee   : > { %1280 = vmatprep.subr.mxu0 %v1057_v28  ;;  %1350 = vmatpush2.msra.mxu1 %v1188_v60  ;;  %v1031_v28 = vld [vmem:[#allocation4 + $0x1d8] sm:$0xff]  ;;  %v1098_v59 = vld [vmem:[#allocation4 + $0x3f0] sm:$0xff] }
  0xef   : > { %1281 = vmatpush2.msra.mxu0 %v1056_v30  ;;  %1351 = vmatprep.subr.mxu1 %v1185_v61  ;;  %v1027_v30 = vld [vmem:[#allocation4 + $0x1b8] sm:$0xff]  ;;  %v1094_v61 = vld [vmem:[#allocation4 + $0x3d0] sm:$0xff] }
  0xf0   : > { %1282 = vmatprep.subr.mxu0 %v1053_v32  ;;  %1352 = vmatpush2.msra.mxu1 %v1184_v62  ;;  %v1023_v32 = vld [vmem:[#allocation4 + $0x198] sm:$0xff] }
  0xf1   : > { %1283 = vmatpush2.msra.mxu0 %v1052_v34  ;;  %1353 = vmatprep.subr.mxu1 %v1181_v0  ;;  %v1019_v34 = vld [vmem:[#allocation4 + $0x178] sm:$0xff]  ;;  %v1090_v0 = vld [vmem:[#allocation4 + $0x3b0] sm:$0xff] }
  0xf2   : > { %1284 = vmatprep.subr.mxu0 %v1049_v36  ;;  %1354 = vmatpush2.msra.mxu1 %v1180_v3  ;;  %v1015_v36 = vld [vmem:[#allocation4 + $0x158] sm:$0xff] }
  0xf3   : > { %1285 = vmatpush2.msra.mxu0 %v1048_v38  ;;  %1355 = vmatprep.subr.mxu1 %v1177_v4  ;;  %v1011_v38 = vld [vmem:[#allocation4 + $0x138] sm:$0xff]  ;;  %v1086_v4 = vld [vmem:[#allocation4 + $0x390] sm:$0xff] }
  0xf4   : > { %1286 = vmatprep.subr.mxu0 %v1045_v40  ;;  %1356 = vmatpush2.msra.mxu1 %v1176_v6  ;;  %v1007_v40 = vld [vmem:[#allocation4 + $0x118] sm:$0xff] }
  0xf5   : > { %1287 = vmatpush2.msra.mxu0 %v1044_v42  ;;  %1357 = vmatprep.subr.mxu1 %v1173_v7  ;;  %v1003_v42 = vld [vmem:[#allocation4 + $0xf8] sm:$0xff]  ;;  %v1082_v7 = vld [vmem:[#allocation4 + $0x370] sm:$0xff] }
  0xf6   : > { %1288 = vmatprep.subr.mxu0 %v1041_v44  ;;  %1358 = vmatpush2.msra.mxu1 %v1172_v8  ;;  %v999_v44 = vld [vmem:[#allocation4 + $0xd8] sm:$0xff]  ;;  %v674_v8 = vsub.s32 2, %v2521_v15 }
  0xf7   : > { %1289 = vmatpush2.msra.mxu0 %v1040_v46  ;;  %1359 = vmatprep.subr.mxu1 %v1169_v9  ;;  %v995_v46 = vld [vmem:[#allocation4 + $0xb8] sm:$0xff] }
  0xf8   : > { %1290 = vmatprep.subr.mxu0 %v1037_v48  ;;  %1360 = vmatpush2.msra.mxu1 %v1168_v10  ;;  %v991_v48 = vld [vmem:[#allocation4 + $0x98] sm:$0xff]  ;;  %v1078_v10 = vld [vmem:[#allocation4 + $0x350] sm:$0xff] }
  0xf9   : > { %1291 = vmatpush2.msra.mxu0 %v1036_v50  ;;  %1361 = vmatprep.subr.mxu1 %v1165_v11  ;;  %v987_v50 = vld [vmem:[#allocation4 + $0x78] sm:$0xff]  ;;  %v678_v11 = vsub.s32 3, %v2521_v15  ;;  %v1936_v15 = vld [vmem:[%s2732_s8 + $0x10] sm:$0xff] }
  0xfa   : > { %1370 = vmatprep.subr.mxu0 %v1035_v51  ;;  %1362 = vmatpush2.msra.mxu1 %v1164_v12  ;;  %v986_v51 = vld [vmem:[#allocation4 + $0x70] sm:$0xff]  ;;  %v1095_v60 = vld [vmem:[#allocation4 + $0x3d8] sm:$0xff] }
  0xfb   : > { %1441 = vmatprep.subr.mxu1 %v1163_v13  ;;  %v1091_v62 = vld [vmem:[#allocation4 + $0x3b8] sm:$0xff]  ;;  %v675_v13 = vrot.slane %v2527_v17, %v674_v8 }
  0xfc   : > { %v1087_v3 = vld [vmem:[#allocation4 + $0x398] sm:$0xff] }
  0xfd   : > { %v1083_v6 = vld [vmem:[#allocation4 + $0x378] sm:$0xff] }
  0xfe   : > { %v1079_v9 = vld [vmem:[#allocation4 + $0x358] sm:$0xff] }
  0xff   : > { %v1075_v12 = vld [vmem:[#allocation4 + $0x338] sm:$0xff] }
 0x100   : > { %v1111_v8 = vld [vmem:[#allocation4 + $0x458] sm:$0xff] }
 0x137   : > { %v750_v2 = vpop.f32.mrf.mxu0 }
 0x138   : > { %v751_v20 = vadd.f32 %v750_v2, %v667_v63  ;;  %v1071_v63 = vld [vmem:[#allocation4 + $0x318] sm:$0xff]  ;;  %v1070_v2 = vld [vmem:[#allocation4 + $0x310] sm:$0xff] }
 0x139   : > { %v821_v1 = vpop.f32.mrf.mxu1  ;;  %v752_v5 = vpop.f32.mrf.mxu0 }
 0x13a   : > { %v753_v21 = vadd.f32 %v752_v5, %v671_v19  ;;  %v822_v22 = vadd.f32 %v821_v1, %v751_v20  ;;  %v679_v19 = vrot.slane %v2527_v17, %v678_v11  ;;  %v1067_v5 = vld [vmem:[#allocation4 + $0x2f8] sm:$0xff]  ;;  %v1058_v17 = vld [vmem:[#allocation4 + $0x2b0] sm:$0xff] }
 0x13b   : > { %v823_v23 = vpop.f32.mrf.mxu1  ;;  %v1106_v11 = vld [vmem:[#allocation4 + $0x430] sm:$0xff] }
 0x13c   : > { %v824_v24 = vadd.f32 %v823_v23, %v753_v21 }
 0x13e   : > { %2236 = vtanh.f32 %v824_v24  ;;  %v1063_v24 = vld [vmem:[#allocation4 + $0x2d8] sm:$0xff] }
 0x13f   : > { %2238 = vtanh.f32 %v822_v22  ;;  %v1066_v22 = vld [vmem:[#allocation4 + $0x2f0] sm:$0xff] }
 0x14b   : > { %v2237_v25 = vpop.eup %2236 }
 0x14c   : > { %v2536_v27 = vpop.eup %2238  ;;  %1292 = vmatprep.mubr.f32.mxu0 %v2237_v25 }
 0x14d   : > { %1293 = vmatmul.mubr.f32.vlgmr.msra.gmra.mxu0 %v2536_v27 }
 0x14e   : > { %1371 = vmatpush1.msra.mxu0 %v1034_v26  ;;  %1434 = vmatprep.mubr.f32.mxu0 %v2237_v25  ;;  %v1062_v26 = vld [vmem:[#allocation4 + $0x2d0] sm:$0xff] }
 0x14f   : > { %1372 = vmatprep.subr.mxu0 %v1031_v28 }
 0x150   : > { %1373 = vmatpush1.msra.mxu0 %v1030_v29 }
 0x151   : > { %1374 = vmatprep.subr.mxu0 %v1027_v30  ;;  %v1059_v30 = vld [vmem:[#allocation4 + $0x2b8] sm:$0xff] }
 0x152   : > { %1375 = vmatpush1.msra.mxu0 %v1026_v31 }
 0x153   : > { %1376 = vmatprep.subr.mxu0 %v1023_v32  ;;  %v1055_v32 = vld [vmem:[#allocation4 + $0x298] sm:$0xff] }
 0x154   : > { %1377 = vmatpush1.msra.mxu0 %v1022_v33  ;;  %v1054_v33 = vld [vmem:[#allocation4 + $0x290] sm:$0xff] }
 0x155   : > { %1378 = vmatprep.subr.mxu0 %v1019_v34  ;;  %v1051_v34 = vld [vmem:[#allocation4 + $0x278] sm:$0xff] }
 0x156   : > { %1379 = vmatpush1.msra.mxu0 %v1018_v35  ;;  %v1050_v35 = vld [vmem:[#allocation4 + $0x270] sm:$0xff] }
 0x157   : > { %1380 = vmatprep.subr.mxu0 %v1015_v36  ;;  %v1047_v36 = vld [vmem:[#allocation4 + $0x258] sm:$0xff] }
 0x158   : > { %1381 = vmatpush1.msra.mxu0 %v1014_v37  ;;  %v1046_v37 = vld [vmem:[#allocation4 + $0x250] sm:$0xff] }
 0x159   : > { %1382 = vmatprep.subr.mxu0 %v1011_v38  ;;  %v1043_v38 = vld [vmem:[#allocation4 + $0x238] sm:$0xff] }
 0x15a   : > { %1383 = vmatpush1.msra.mxu0 %v1010_v39  ;;  %v1042_v39 = vld [vmem:[#allocation4 + $0x230] sm:$0xff] }
 0x15b   : > { %1384 = vmatprep.subr.mxu0 %v1007_v40  ;;  %v1039_v40 = vld [vmem:[#allocation4 + $0x218] sm:$0xff] }
 0x15c   : > { %1385 = vmatpush1.msra.mxu0 %v1006_v41  ;;  %v1038_v41 = vld [vmem:[#allocation4 + $0x210] sm:$0xff] }
 0x15d   : > { %1386 = vmatprep.subr.mxu0 %v1003_v42 }
 0x15e   : > { %1387 = vmatpush1.msra.mxu0 %v1002_v43  ;;  %v1162_v43 = vld [vmem:[#allocation4 + $0x5f0] sm:$0xff] }
 0x15f   : > { %1388 = vmatprep.subr.mxu0 %v999_v44 }
 0x160   : > { %1389 = vmatpush1.msra.mxu0 %v998_v45  ;;  %v1159_v45 = vld [vmem:[#allocation4 + $0x5d8] sm:$0xff] }
 0x161   : > { %1390 = vmatprep.subr.mxu0 %v995_v46  ;;  %v1158_v46 = vld [vmem:[#allocation4 + $0x5d0] sm:$0xff] }
 0x162   : > { %1391 = vmatpush1.msra.mxu0 %v994_v47  ;;  %v1155_v47 = vld [vmem:[#allocation4 + $0x5b8] sm:$0xff] }
 0x163   : > { %1392 = vmatprep.subr.mxu0 %v991_v48  ;;  %v1154_v48 = vld [vmem:[#allocation4 + $0x5b0] sm:$0xff] }
 0x164   : > { %1393 = vmatpush1.msra.mxu0 %v990_v49  ;;  %v1151_v49 = vld [vmem:[#allocation4 + $0x598] sm:$0xff] }
 0x165   : > { %1394 = vmatprep.subr.mxu0 %v987_v50  ;;  %v1150_v50 = vld [vmem:[#allocation4 + $0x590] sm:$0xff] }
 0x166   : > { %1395 = vmatpush1.msra.mxu0 %v986_v51  ;;  %v1146_v51 = vld [vmem:[#allocation4 + $0x570] sm:$0xff] }
 0x167   : > { %1396 = vmatprep.subr.mxu0 %v983_v52  ;;  %v1143_v52 = vld [vmem:[#allocation4 + $0x558] sm:$0xff] }
 0x168   : > { %1397 = vmatpush1.msra.mxu0 %v982_v53  ;;  %v1142_v53 = vld [vmem:[#allocation4 + $0x550] sm:$0xff] }
 0x169   : > { %1398 = vmatprep.subr.mxu0 %v979_v54  ;;  %v1139_v54 = vld [vmem:[#allocation4 + $0x538] sm:$0xff] }
 0x16a   : > { %1399 = vmatpush1.msra.mxu0 %v978_v55  ;;  %v1138_v55 = vld [vmem:[#allocation4 + $0x530] sm:$0xff] }
 0x16b   : > { %1400 = vmatprep.subr.mxu0 %v975_v56  ;;  %v1135_v56 = vld [vmem:[#allocation4 + $0x518] sm:$0xff] }
 0x16c   : > { %1401 = vmatpush1.msra.mxu0 %v974_v57  ;;  %v1134_v57 = vld [vmem:[#allocation4 + $0x510] sm:$0xff] }
 0x16d   : > { %1402 = vmatprep.subr.mxu0 %v1099_v58  ;;  %v1131_v58 = vld [vmem:[#allocation4 + $0x4f8] sm:$0xff] }
 0x16e   : > { %1403 = vmatpush2.msra.mxu0 %v1098_v59  ;;  %v1130_v59 = vld [vmem:[#allocation4 + $0x4f0] sm:$0xff] }
 0x16f   : > { %1404 = vmatprep.subr.mxu0 %v1095_v60  ;;  %v1127_v60 = vld [vmem:[#allocation4 + $0x4d8] sm:$0xff] }
 0x170   : > { %1405 = vmatpush2.msra.mxu0 %v1094_v61  ;;  %v1126_v61 = vld [vmem:[#allocation4 + $0x4d0] sm:$0xff] }
 0x171   : > { %1406 = vmatprep.subr.mxu0 %v1091_v62  ;;  %v1123_v62 = vld [vmem:[#allocation4 + $0x4b8] sm:$0xff] }
 0x172   : > { %1407 = vmatpush2.msra.mxu0 %v1090_v0  ;;  %v1122_v0 = vld [vmem:[#allocation4 + $0x4b0] sm:$0xff] }
 0x173   : > { %1408 = vmatprep.subr.mxu0 %v1087_v3  ;;  %v1119_v3 = vld [vmem:[#allocation4 + $0x498] sm:$0xff] }
 0x174   : > { %1409 = vmatpush2.msra.mxu0 %v1086_v4  ;;  %v1118_v4 = vld [vmem:[#allocation4 + $0x490] sm:$0xff] }
 0x175   : > { %1410 = vmatprep.subr.mxu0 %v1083_v6  ;;  %v1115_v6 = vld [vmem:[#allocation4 + $0x478] sm:$0xff] }
 0x176   : > { %1411 = vmatpush2.msra.mxu0 %v1082_v7  ;;  %v1114_v7 = vld [vmem:[#allocation4 + $0x470] sm:$0xff] }
 0x177   : > { %1412 = vmatprep.subr.mxu0 %v1079_v9  ;;  %v1110_v9 = vld [vmem:[#allocation4 + $0x450] sm:$0xff] }
 0x178   : > { %1413 = vmatpush2.msra.mxu0 %v1078_v10  ;;  %v1107_v10 = vld [vmem:[#allocation4 + $0x438] sm:$0xff] }
 0x179   : > { %1414 = vmatprep.subr.mxu0 %v1075_v12  ;;  %v892_v20 = vpop.f32.mrf.mxu0  ;;  %v1103_v12 = vld [vmem:[#allocation4 + $0x418] sm:$0xff] }
 0x17a   : > { %v963_v1 = vpop.f32.mrf.mxu1  ;;  %1415 = vmatpush2.msra.mxu0 %v1074_v14  ;;  %v893_v21 = vadd.f32 %v892_v20, %v675_v13  ;;  %v1102_v13 = vld [vmem:[#allocation4 + $0x410] sm:$0xff]  ;;  %v1227_v14 = vld [vmem:[#allocation4 + $0x7f8] sm:$0xff] }
 0x17b   : > { %1416 = vmatprep.subr.mxu0 %v1071_v63  ;;  %v894_v23 = vpop.f32.mrf.mxu0  ;;  %v1226_v63 = vld [vmem:[#allocation4 + $0x7f0] sm:$0xff]  ;;  %v1219_v20 = vld [vmem:[#allocation4 + $0x7b8] sm:$0xff] }
 0x17c   : > { %1417 = vmatpush2.msra.mxu0 %v1070_v2  ;;  %v895_v25 = vadd.f32 %v894_v23, %v679_v19  ;;  %v964_v28 = vadd.f32 %v963_v1, %v893_v21  ;;  %v965_v29 = vpop.f32.mrf.mxu1  ;;  %v1223_v19 = vld [vmem:[#allocation4 + $0x7d8] sm:$0xff]  ;;  %v1222_v2 = vld [vmem:[#allocation4 + $0x7d0] sm:$0xff] }
 0x17d   : > { %1418 = vmatprep.subr.mxu0 %v1067_v5  ;;  %v1218_v1 = vld [vmem:[#allocation4 + $0x7b0] sm:$0xff]  ;;  %v1215_v5 = vld [vmem:[#allocation4 + $0x798] sm:$0xff] }
 0x17e   : > { %1419 = vmatpush2.msra.mxu0 %v1066_v22  ;;  %v966_v31 = vadd.f32 %v965_v29, %v895_v25  ;;  %v1214_v21 = vld [vmem:[#allocation4 + $0x790] sm:$0xff]  ;;  %v1211_v22 = vld [vmem:[#allocation4 + $0x778] sm:$0xff] }
 0x17f   : > { %1420 = vmatprep.subr.mxu0 %v1063_v24  ;;  %v1210_v23 = vld [vmem:[#allocation4 + $0x770] sm:$0xff]  ;;  %v1207_v24 = vld [vmem:[#allocation4 + $0x758] sm:$0xff] }
 0x180   : > { %1421 = vmatpush2.msra.mxu0 %v1062_v26  ;;  %2240 = vtanh.f32 %v966_v31  ;;  %v1206_v25 = vld [vmem:[#allocation4 + $0x750] sm:$0xff]  ;;  %v1203_v26 = vld [vmem:[#allocation4 + $0x738] sm:$0xff] }
 0x181   : > { %1422 = vmatprep.subr.mxu0 %v1059_v30  ;;  %2242 = vtanh.f32 %v964_v28  ;;  %v1202_v28 = vld [vmem:[#allocation4 + $0x730] sm:$0xff]  ;;  %v1199_v29 = vld [vmem:[#allocation4 + $0x718] sm:$0xff] }
 0x182   : > { %1423 = vmatpush2.msra.mxu0 %v1058_v17  ;;  %v1198_v30 = vld [vmem:[#allocation4 + $0x710] sm:$0xff]  ;;  %v1195_v31 = vld [vmem:[#allocation4 + $0x6f8] sm:$0xff] }
 0x183   : > { %1424 = vmatprep.subr.mxu0 %v1055_v32  ;;  %v1194_v17 = vld [vmem:[#allocation4 + $0x6f0] sm:$0xff]  ;;  %v1191_v32 = vld [vmem:[#allocation4 + $0x6d8] sm:$0xff] }
 0x184   : > { %1425 = vmatpush2.msra.mxu0 %v1054_v33  ;;  %v1190_v33 = vld [vmem:[#allocation4 + $0x6d0] sm:$0xff] }
 0x185   : > { %1426 = vmatprep.subr.mxu0 %v1051_v34  ;;  %v1187_v34 = vld [vmem:[#allocation4 + $0x6b8] sm:$0xff] }
 0x186   : > { %1427 = vmatpush2.msra.mxu0 %v1050_v35  ;;  %v1186_v35 = vld [vmem:[#allocation4 + $0x6b0] sm:$0xff] }
 0x187   : > { %1428 = vmatprep.subr.mxu0 %v1047_v36  ;;  %v1183_v36 = vld [vmem:[#allocation4 + $0x698] sm:$0xff] }
 0x188   : > { %1429 = vmatpush2.msra.mxu0 %v1046_v37  ;;  %v1182_v37 = vld [vmem:[#allocation4 + $0x690] sm:$0xff] }
 0x189   : > { %1430 = vmatprep.subr.mxu0 %v1043_v38  ;;  %v1179_v38 = vld [vmem:[#allocation4 + $0x678] sm:$0xff] }
 0x18a   : > { %1431 = vmatpush2.msra.mxu0 %v1042_v39  ;;  %v1178_v39 = vld [vmem:[#allocation4 + $0x670] sm:$0xff] }
 0x18b   : > { %1432 = vmatprep.subr.mxu0 %v1039_v40  ;;  %v1175_v40 = vld [vmem:[#allocation4 + $0x658] sm:$0xff] }
 0x18c   : > { %1433 = vmatpush2.msra.mxu0 %v1038_v41  ;;  %v1174_v41 = vld [vmem:[#allocation4 + $0x650] sm:$0xff] }
 0x18d   : > { %1435 = vmatmul.mubr.f32.vlgmr.msra.gmra.mxu0 %v2536_v27  ;;  %v2241_v42 = vpop.eup %2240  ;;  %v1147_v27 = vld [vmem:[#allocation4 + $0x578] sm:$0xff] }
 0x18e   : > { %v2544_v44 = vpop.eup %2242  ;;  %1363 = vmatprep.mubr.f32.mxu1 %v2241_v42 }
 0x18f   : > { %1364 = vmatmul.mubr.f32.vlgmr.msra.gmra.mxu1 %v2544_v44 }
 0x190   : > { %1442 = vmatpush1.msra.mxu1 %v1162_v43  ;;  %1505 = vmatprep.mubr.f32.mxu1 %v2241_v42  ;;  %v1171_v42 = vld [vmem:[#allocation4 + $0x638] sm:$0xff]  ;;  %v1170_v43 = vld [vmem:[#allocation4 + $0x630] sm:$0xff] }
 0x191   : > { %1443 = vmatprep.subr.mxu1 %v1159_v45  ;;  %v1167_v45 = vld [vmem:[#allocation4 + $0x618] sm:$0xff] }
 0x192   : > { %1444 = vmatpush1.msra.mxu1 %v1158_v46  ;;  %v1166_v46 = vld [vmem:[#allocation4 + $0x610] sm:$0xff] }
 0x193   : > { %1445 = vmatprep.subr.mxu1 %v1155_v47 }
 0x194   : > { %1446 = vmatpush1.msra.mxu1 %v1154_v48 }
 0x195   : > { %1447 = vmatprep.subr.mxu1 %v1151_v49 }
 0x196   : > { %1448 = vmatpush1.msra.mxu1 %v1150_v50 }
 0x197   : > { %1449 = vmatprep.subr.mxu1 %v1147_v27 }
 0x198   : > { %1450 = vmatpush1.msra.mxu1 %v1146_v51 }
 0x199   : > { %1451 = vmatprep.subr.mxu1 %v1143_v52 }
 0x19a   : > { %1452 = vmatpush1.msra.mxu1 %v1142_v53 }
 0x19b   : > { %1453 = vmatprep.subr.mxu1 %v1139_v54 }
 0x19c   : > { %1454 = vmatpush1.msra.mxu1 %v1138_v55 }
 0x19d   : > { %1455 = vmatprep.subr.mxu1 %v1135_v56 }
 0x19e   : > { %1456 = vmatpush1.msra.mxu1 %v1134_v57 }
 0x19f   : > { %1457 = vmatprep.subr.mxu1 %v1131_v58 }
 0x1a0   : > { %1458 = vmatpush1.msra.mxu1 %v1130_v59 }
 0x1a1   : > { %1459 = vmatprep.subr.mxu1 %v1127_v60  ;;  %v1574_v60 = vld [vmem:[#allocation6 + $0xf8] sm:$0xff] }
 0x1a2   : > { %1460 = vmatpush1.msra.mxu1 %v1126_v61  ;;  %v1638_v61 = vld [vmem:[#allocation6 + $0x2f8] sm:$0xff]  ;;  %1683 = vmatprep.subr.mxu0 %v1574_v60 }
 0x1a3   : > { %1461 = vmatprep.subr.mxu1 %v1123_v62  ;;  %v1573_v62 = vld [vmem:[#allocation6 + $0xf0] sm:$0xff]  ;;  %v1610_v60 = vld [vmem:[#allocation6 + $0x218] sm:$0xff] }
 0x1a4   : > { %1462 = vmatpush1.msra.mxu1 %v1122_v0  ;;  %v1637_v0 = vld [vmem:[#allocation6 + $0x2f0] sm:$0xff]  ;;  %1684 = vmatpush1.msra.mxu0 %v1573_v62 }
 0x1a5   : > { %1463 = vmatprep.subr.mxu1 %v1119_v3  ;;  %v1572_v3 = vld [vmem:[#allocation6 + $0xe8] sm:$0xff]  ;;  %v1609_v62 = vld [vmem:[#allocation6 + $0x210] sm:$0xff] }
 0x1a6   : > { %1464 = vmatpush1.msra.mxu1 %v1118_v4  ;;  %v1636_v4 = vld [vmem:[#allocation6 + $0x2e8] sm:$0xff]  ;;  %1685 = vmatprep.subr.mxu0 %v1572_v3 }
 0x1a7   : > { %1465 = vmatprep.subr.mxu1 %v1115_v6  ;;  %v1571_v6 = vld [vmem:[#allocation6 + $0xe0] sm:$0xff]  ;;  %v1608_v3 = vld [vmem:[#allocation6 + $0x208] sm:$0xff] }
 0x1a8   : > { %1466 = vmatpush1.msra.mxu1 %v1114_v7  ;;  %v1635_v7 = vld [vmem:[#allocation6 + $0x2e0] sm:$0xff]  ;;  %1686 = vmatpush1.msra.mxu0 %v1571_v6 }
 0x1a9   : > { %1467 = vmatprep.subr.mxu1 %v1111_v8  ;;  %v1570_v8 = vld [vmem:[#allocation6 + $0xd8] sm:$0xff]  ;;  %v1607_v6 = vld [vmem:[#allocation6 + $0x200] sm:$0xff] }
 0x1aa   : > { %1468 = vmatpush1.msra.mxu1 %v1110_v9  ;;  %v1634_v9 = vld [vmem:[#allocation6 + $0x2d8] sm:$0xff]  ;;  %1687 = vmatprep.subr.mxu0 %v1570_v8 }
 0x1ab   : > { %1469 = vmatprep.subr.mxu1 %v1107_v10  ;;  %v1569_v10 = vld [vmem:[#allocation6 + $0xd0] sm:$0xff]  ;;  %v1670_v8 = vld [vmem:[#allocation6 + $0x3f8] sm:$0xff] }
 0x1ac   : > { %1470 = vmatpush1.msra.mxu1 %v1106_v11  ;;  %v1633_v11 = vld [vmem:[#allocation6 + $0x2d0] sm:$0xff]  ;;  %1688 = vmatpush1.msra.mxu0 %v1569_v10 }
 0x1ad   : > { %1471 = vmatprep.subr.mxu1 %v1103_v12  ;;  %v1568_v12 = vld [vmem:[#allocation6 + $0xc8] sm:$0xff]  ;;  %v1669_v10 = vld [vmem:[#allocation6 + $0x3f0] sm:$0xff] }
 0x1ae   : > { %1472 = vmatpush1.msra.mxu1 %v1102_v13  ;;  %v1632_v13 = vld [vmem:[#allocation6 + $0x2c8] sm:$0xff]  ;;  %1689 = vmatprep.subr.mxu0 %v1568_v12 }
 0x1af   : > { %1473 = vmatprep.subr.mxu1 %v1227_v14  ;;  %v1567_v14 = vld [vmem:[#allocation6 + $0xc0] sm:$0xff]  ;;  %v1668_v12 = vld [vmem:[#allocation6 + $0x3e8] sm:$0xff] }
 0x1b0   : > { %1474 = vmatpush2.msra.mxu1 %v1226_v63  ;;  %v1631_v63 = vld [vmem:[#allocation6 + $0x2c0] sm:$0xff]  ;;  %1690 = vmatpush1.msra.mxu0 %v1567_v14 }
 0x1b1   : > { %1475 = vmatprep.subr.mxu1 %v1223_v19  ;;  %v1566_v19 = vld [vmem:[#allocation6 + $0xb8] sm:$0xff]  ;;  %v1667_v14 = vld [vmem:[#allocation6 + $0x3e0] sm:$0xff] }
 0x1b2   : > { %1476 = vmatpush2.msra.mxu1 %v1222_v2  ;;  %v1630_v2 = vld [vmem:[#allocation6 + $0x2b8] sm:$0xff]  ;;  %1691 = vmatprep.subr.mxu0 %v1566_v19 }
 0x1b3   : > { %1477 = vmatprep.subr.mxu1 %v1219_v20  ;;  %v1565_v20 = vld [vmem:[#allocation6 + $0xb0] sm:$0xff]  ;;  %v1666_v19 = vld [vmem:[#allocation6 + $0x3d8] sm:$0xff] }
 0x1b4   : > { %1478 = vmatpush2.msra.mxu1 %v1218_v1  ;;  %v1629_v1 = vld [vmem:[#allocation6 + $0x2b0] sm:$0xff]  ;;  %1692 = vmatpush1.msra.mxu0 %v1565_v20 }
 0x1b5   : > { %1479 = vmatprep.subr.mxu1 %v1215_v5  ;;  %v1564_v5 = vld [vmem:[#allocation6 + $0xa8] sm:$0xff]  ;;  %v1665_v20 = vld [vmem:[#allocation6 + $0x3d0] sm:$0xff] }
 0x1b6   : > { %1480 = vmatpush2.msra.mxu1 %v1214_v21  ;;  %v1628_v21 = vld [vmem:[#allocation6 + $0x2a8] sm:$0xff]  ;;  %1693 = vmatprep.subr.mxu0 %v1564_v5 }
 0x1b7   : > { %1481 = vmatprep.subr.mxu1 %v1211_v22  ;;  %v1563_v22 = vld [vmem:[#allocation6 + $0xa0] sm:$0xff]  ;;  %v1664_v5 = vld [vmem:[#allocation6 + $0x3c8] sm:$0xff] }
 0x1b8   : > { %1482 = vmatpush2.msra.mxu1 %v1210_v23  ;;  %v1627_v23 = vld [vmem:[#allocation6 + $0x2a0] sm:$0xff]  ;;  %1694 = vmatpush1.msra.mxu0 %v1563_v22 }
 0x1b9   : > { %1483 = vmatprep.subr.mxu1 %v1207_v24  ;;  %v1562_v24 = vld [vmem:[#allocation6 + $0x98] sm:$0xff]  ;;  %v1663_v22 = vld [vmem:[#allocation6 + $0x3c0] sm:$0xff] }
 0x1ba   : > { %1484 = vmatpush2.msra.mxu1 %v1206_v25  ;;  %v1626_v25 = vld [vmem:[#allocation6 + $0x298] sm:$0xff]  ;;  %1695 = vmatprep.subr.mxu0 %v1562_v24 }
 0x1bb   : > { %1485 = vmatprep.subr.mxu1 %v1203_v26  ;;  %v1561_v26 = vld [vmem:[#allocation6 + $0x90] sm:$0xff]  ;;  %v1662_v24 = vld [vmem:[#allocation6 + $0x3b8] sm:$0xff] }
 0x1bc   : > { %1486 = vmatpush2.msra.mxu1 %v1202_v28  ;;  %v1625_v28 = vld [vmem:[#allocation6 + $0x290] sm:$0xff]  ;;  %1696 = vmatpush1.msra.mxu0 %v1561_v26 }
 0x1bd   : > { %1487 = vmatprep.subr.mxu1 %v1199_v29  ;;  %v1560_v29 = vld [vmem:[#allocation6 + $0x88] sm:$0xff]  ;;  %v1661_v26 = vld [vmem:[#allocation6 + $0x3b0] sm:$0xff] }
 0x1be   : > { %1488 = vmatpush2.msra.mxu1 %v1198_v30  ;;  %v1624_v30 = vld [vmem:[#allocation6 + $0x288] sm:$0xff]  ;;  %1697 = vmatprep.subr.mxu0 %v1560_v29 }
 0x1bf   : > { %1489 = vmatprep.subr.mxu1 %v1195_v31  ;;  %v1559_v31 = vld [vmem:[#allocation6 + $0x80] sm:$0xff]  ;;  %v1660_v29 = vld [vmem:[#allocation6 + $0x3a8] sm:$0xff] }
 0x1c0   : > { %1490 = vmatpush2.msra.mxu1 %v1194_v17  ;;  %v1623_v17 = vld [vmem:[#allocation6 + $0x280] sm:$0xff]  ;;  %1698 = vmatpush1.msra.mxu0 %v1559_v31 }
 0x1c1   : > { %1491 = vmatprep.subr.mxu1 %v1191_v32  ;;  %v1558_v32 = vld [vmem:[#allocation6 + $0x78] sm:$0xff]  ;;  %v1659_v31 = vld [vmem:[#allocation6 + $0x3a0] sm:$0xff] }
 0x1c2   : > { %1492 = vmatpush2.msra.mxu1 %v1190_v33  ;;  %v1622_v33 = vld [vmem:[#allocation6 + $0x278] sm:$0xff]  ;;  %1699 = vmatprep.subr.mxu0 %v1558_v32 }
 0x1c3   : > { %1493 = vmatprep.subr.mxu1 %v1187_v34  ;;  %v1557_v34 = vld [vmem:[#allocation6 + $0x70] sm:$0xff]  ;;  %v1658_v32 = vld [vmem:[#allocation6 + $0x398] sm:$0xff] }
 0x1c4   : > { %1494 = vmatpush2.msra.mxu1 %v1186_v35  ;;  %v1621_v35 = vld [vmem:[#allocation6 + $0x270] sm:$0xff]  ;;  %1700 = vmatpush1.msra.mxu0 %v1557_v34 }
 0x1c5   : > { %1495 = vmatprep.subr.mxu1 %v1183_v36  ;;  %v1556_v36 = vld [vmem:[#allocation6 + $0x68] sm:$0xff] }
 0x1c6   : > { %1496 = vmatpush2.msra.mxu1 %v1182_v37  ;;  %v1620_v37 = vld [vmem:[#allocation6 + $0x268] sm:$0xff]  ;;  %1701 = vmatprep.subr.mxu0 %v1556_v36 }
 0x1c7   : > { %1497 = vmatprep.subr.mxu1 %v1179_v38  ;;  %v1555_v38 = vld [vmem:[#allocation6 + $0x60] sm:$0xff] }
 0x1c8   : > { %1498 = vmatpush2.msra.mxu1 %v1178_v39  ;;  %v1619_v39 = vld [vmem:[#allocation6 + $0x260] sm:$0xff]  ;;  %1702 = vmatpush1.msra.mxu0 %v1555_v38 }
 0x1c9   : > { %1499 = vmatprep.subr.mxu1 %v1175_v40  ;;  %v1554_v40 = vld [vmem:[#allocation6 + $0x58] sm:$0xff] }
 0x1ca   : > { %1500 = vmatpush2.msra.mxu1 %v1174_v41  ;;  %v1618_v41 = vld [vmem:[#allocation6 + $0x258] sm:$0xff]  ;;  %1703 = vmatprep.subr.mxu0 %v1554_v40 }
 0x1cb   : > { %1501 = vmatprep.subr.mxu1 %v1171_v42  ;;  %v1553_v42 = vld [vmem:[#allocation6 + $0x50] sm:$0xff] }
 0x1cc   : > { %1502 = vmatpush2.msra.mxu1 %v1170_v43  ;;  %v1617_v43 = vld [vmem:[#allocation6 + $0x250] sm:$0xff]  ;;  %1704 = vmatpush1.msra.mxu0 %v1553_v42 }
 0x1cd   : > { %1503 = vmatprep.subr.mxu1 %v1167_v45  ;;  %v1552_v45 = vld [vmem:[#allocation6 + $0x48] sm:$0xff] }
 0x1ce   : > { %1504 = vmatpush2.msra.mxu1 %v1166_v46  ;;  %v1616_v46 = vld [vmem:[#allocation6 + $0x248] sm:$0xff]  ;;  %1705 = vmatprep.subr.mxu0 %v1552_v45 }
 0x1cf   : > { %1506 = vmatmul.mubr.f32.vlgmr.msra.gmra.mxu1 %v2544_v44  ;;  %1754 = vmatprep.subr.mxu1 %v1638_v61  ;;  %v1545_v61 = vld [vmem:[#allocation6 + $0x10] sm:$0xff] }
 0x1d0   : > { %1755 = vmatpush1.msra.mxu1 %v1637_v0  ;;  %v1544_v0 = vld [vmem:[#allocation6 + $0x8] sm:$0xff] }
 0x1d1   : > { %1756 = vmatprep.subr.mxu1 %v1636_v4  ;;  %v1543_v4 = vld [vmem:[#allocation6] sm:$0xff] }
 0x1d2   : > { %1757 = vmatpush1.msra.mxu1 %v1635_v7  ;;  %v1606_v7 = vld [vmem:[#allocation6 + $0x1f8] sm:$0xff] }
 0x1d3   : > { %1758 = vmatprep.subr.mxu1 %v1634_v9  ;;  %v1605_v9 = vld [vmem:[#allocation6 + $0x1f0] sm:$0xff] }
 0x1d4   : > { %1759 = vmatpush1.msra.mxu1 %v1633_v11  ;;  %v1604_v11 = vld [vmem:[#allocation6 + $0x1e8] sm:$0xff] }
 0x1d5   : > { %1760 = vmatprep.subr.mxu1 %v1632_v13  ;;  %v1603_v13 = vld [vmem:[#allocation6 + $0x1e0] sm:$0xff] }
 0x1d6   : > { %1761 = vmatpush1.msra.mxu1 %v1631_v63  ;;  %v1602_v63 = vld [vmem:[#allocation6 + $0x1d8] sm:$0xff] }
 0x1d7   : > { %1762 = vmatprep.subr.mxu1 %v1630_v2  ;;  %v1601_v2 = vld [vmem:[#allocation6 + $0x1d0] sm:$0xff] }
 0x1d8   : > { %1763 = vmatpush1.msra.mxu1 %v1629_v1  ;;  %v1600_v1 = vld [vmem:[#allocation6 + $0x1c8] sm:$0xff] }
 0x1d9   : > { %1764 = vmatprep.subr.mxu1 %v1628_v21  ;;  %v1599_v21 = vld [vmem:[#allocation6 + $0x1c0] sm:$0xff] }
 0x1da   : > { %1765 = vmatpush1.msra.mxu1 %v1627_v23  ;;  %v1598_v23 = vld [vmem:[#allocation6 + $0x1b8] sm:$0xff] }
 0x1db   : > { %1766 = vmatprep.subr.mxu1 %v1626_v25  ;;  %v1597_v25 = vld [vmem:[#allocation6 + $0x1b0] sm:$0xff] }
 0x1dc   : > { %1767 = vmatpush1.msra.mxu1 %v1625_v28  ;;  %v1596_v28 = vld [vmem:[#allocation6 + $0x1a8] sm:$0xff] }
 0x1dd   : > { %1768 = vmatprep.subr.mxu1 %v1624_v30  ;;  %v1595_v30 = vld [vmem:[#allocation6 + $0x1a0] sm:$0xff] }
 0x1de   : > { %1769 = vmatpush1.msra.mxu1 %v1623_v17  ;;  %v1594_v17 = vld [vmem:[#allocation6 + $0x198] sm:$0xff] }
 0x1df   : > { %1770 = vmatprep.subr.mxu1 %v1622_v33 }
 0x1e0   : > { %1771 = vmatpush1.msra.mxu1 %v1621_v35 }
 0x1e1   : > { %1772 = vmatprep.subr.mxu1 %v1620_v37 }
 0x1e2   : > { %1773 = vmatpush1.msra.mxu1 %v1619_v39 }
 0x1e3   : > { %1774 = vmatprep.subr.mxu1 %v1618_v41 }
 0x1e4   : > { %1775 = vmatpush1.msra.mxu1 %v1617_v43 }
 0x1e5   : > { %1776 = vmatprep.subr.mxu1 %v1616_v46  ;;  %v1593_v46 = vld [vmem:[#allocation6 + $0x190] sm:$0xff] }
 0x20d   : > { %v1294_v47 = vpop.f32.mrf.mxu0 }
 0x20f   : > { %v1296_v49 = vpop.f32.mrf.mxu0 }
 0x24d   : > { %v1436_v50 = vpop.f32.mrf.mxu0 }
 0x24f   : > { %v1365_v48 = vpop.f32.mrf.mxu1  ;;  %v1438_v53 = vpop.f32.mrf.mxu0 }
 0x250   : > { %v2550_v55 = vadd.f32 %v1365_v48, %v1294_v47  ;;  %v1551_v47 = vld [vmem:[#allocation6 + $0x40] sm:$0xff] }
 0x251   : > { %v1367_v27 = vpop.f32.mrf.mxu1  ;;  %v1615_v48 = vld [vmem:[#allocation6 + $0x240] sm:$0xff]  ;;  %1706 = vmatpush1.msra.mxu0 %v1551_v47  ;;  %v1657_v47 = vld [vmem:[#allocation6 + $0x390] sm:$0xff] }
 0x252   : > { %v2548_v52 = vadd.f32 %v1367_v27, %v1296_v49  ;;  %v1550_v49 = vld [vmem:[#allocation6 + $0x38] sm:$0xff]  ;;  %v1549_v27 = vld [vmem:[#allocation6 + $0x30] sm:$0xff]  ;;  %1777 = vmatpush1.msra.mxu1 %v1615_v48  ;;  %v1592_v48 = vld [vmem:[#allocation6 + $0x188] sm:$0xff] }
 0x253   : > { %1707 = vmatprep.subr.mxu0 %v1550_v49  ;;  %v1656_v49 = vld [vmem:[#allocation6 + $0x388] sm:$0xff] }
 0x254   : > { %v1512_v58 = vmax.f32 %v2550_v55, %v2548_v52  ;;  %1708 = vmatpush1.msra.mxu0 %v1549_v27  ;;  %v1655_v27 = vld [vmem:[#allocation6 + $0x380] sm:$0xff] }
 0x28f   : > { %v1507_v51 = vpop.f32.mrf.mxu1 }
 0x290   : > { %v2552_v56 = vadd.f32 %v1507_v51, %v1436_v50  ;;  %v1614_v50 = vld [vmem:[#allocation6 + $0x238] sm:$0xff]  ;;  %v1613_v51 = vld [vmem:[#allocation6 + $0x230] sm:$0xff] }
 0x291   : > { %v1509_v54 = vpop.f32.mrf.mxu1  ;;  %1778 = vmatprep.subr.mxu1 %v1614_v50  ;;  %v1591_v50 = vld [vmem:[#allocation6 + $0x180] sm:$0xff] }
 0x292   : > { %v2554_v57 = vadd.f32 %v1509_v54, %v1438_v53  ;;  %v1548_v53 = vld [vmem:[#allocation6 + $0x28] sm:$0xff]  ;;  %1779 = vmatpush1.msra.mxu1 %v1613_v51  ;;  %v1590_v51 = vld [vmem:[#allocation6 + $0x178] sm:$0xff] }
 0x293   : > { %v1612_v54 = vld [vmem:[#allocation6 + $0x228] sm:$0xff]  ;;  %1709 = vmatprep.subr.mxu0 %v1548_v53  ;;  %v1654_v53 = vld [vmem:[#allocation6 + $0x378] sm:$0xff] }
 0x294   : > { %v1513_v44 = vmax.f32 %v2552_v56, %v2554_v57  ;;  %1780 = vmatprep.subr.mxu1 %v1612_v54  ;;  %v1589_v54 = vld [vmem:[#allocation6 + $0x170] sm:$0xff] }
 0x296   : > { %v1514_v59 = vmax.f32 %v1512_v58, %v1513_v44  ;;  %v1547_v58 = vld [vmem:[#allocation6 + $0x20] sm:$0xff] }
 0x297   : > { %v1611_v44 = vld [vmem:[#allocation6 + $0x220] sm:$0xff]  ;;  %1710 = vmatpush1.msra.mxu0 %v1547_v58  ;;  %v1653_v58 = vld [vmem:[#allocation6 + $0x370] sm:$0xff] }
 0x298   : > { %1515 = vmax.xlane.f32.xlu0 %v1514_v59  ;;  %v1546_v59 = vld [vmem:[#allocation6 + $0x18] sm:$0xff]  ;;  %1781 = vmatpush1.msra.mxu1 %v1611_v44  ;;  %v1588_v44 = vld [vmem:[#allocation6 + $0x168] sm:$0xff] }
 0x299   : > { %1711 = vmatprep.subr.mxu0 %v1546_v59  ;;  %1782 = vmatprep.subr.mxu1 %v1610_v60  ;;  %v1652_v59 = vld [vmem:[#allocation6 + $0x368] sm:$0xff]  ;;  %v1587_v60 = vld [vmem:[#allocation6 + $0x160] sm:$0xff] }
 0x29a   : > { %1712 = vmatpush1.msra.mxu0 %v1545_v61  ;;  %1783 = vmatpush1.msra.mxu1 %v1609_v62  ;;  %v1651_v61 = vld [vmem:[#allocation6 + $0x360] sm:$0xff]  ;;  %v1586_v62 = vld [vmem:[#allocation6 + $0x158] sm:$0xff] }
 0x29b   : > { %1713 = vmatprep.subr.mxu0 %v1544_v0  ;;  %1784 = vmatprep.subr.mxu1 %v1608_v3  ;;  %v1650_v0 = vld [vmem:[#allocation6 + $0x358] sm:$0xff]  ;;  %v1585_v3 = vld [vmem:[#allocation6 + $0x150] sm:$0xff] }
 0x29c   : > { %1714 = vmatpush1.msra.mxu0 %v1543_v4  ;;  %1785 = vmatpush1.msra.mxu1 %v1607_v6  ;;  %v1649_v4 = vld [vmem:[#allocation6 + $0x350] sm:$0xff]  ;;  %v1584_v6 = vld [vmem:[#allocation6 + $0x148] sm:$0xff] }
 0x29d   : > { %1715 = vmatprep.subr.mxu0 %v1606_v7  ;;  %1786 = vmatprep.subr.mxu1 %v1670_v8  ;;  %v1648_v7 = vld [vmem:[#allocation6 + $0x348] sm:$0xff]  ;;  %v1583_v8 = vld [vmem:[#allocation6 + $0x140] sm:$0xff] }
 0x29e   : > { %1716 = vmatpush2.msra.mxu0 %v1605_v9  ;;  %1787 = vmatpush2.msra.mxu1 %v1669_v10  ;;  %v1647_v9 = vld [vmem:[#allocation6 + $0x340] sm:$0xff]  ;;  %v1582_v10 = vld [vmem:[#allocation6 + $0x138] sm:$0xff] }
 0x29f   : > { %1717 = vmatprep.subr.mxu0 %v1604_v11  ;;  %1788 = vmatprep.subr.mxu1 %v1668_v12  ;;  %v1646_v11 = vld [vmem:[#allocation6 + $0x338] sm:$0xff]  ;;  %v1581_v12 = vld [vmem:[#allocation6 + $0x130] sm:$0xff] }
 0x2a0   : > { %1718 = vmatpush2.msra.mxu0 %v1603_v13  ;;  %1789 = vmatpush2.msra.mxu1 %v1667_v14  ;;  %v1645_v13 = vld [vmem:[#allocation6 + $0x330] sm:$0xff]  ;;  %v1580_v14 = vld [vmem:[#allocation6 + $0x128] sm:$0xff] }
 0x2a1   : > { %1719 = vmatprep.subr.mxu0 %v1602_v63  ;;  %1790 = vmatprep.subr.mxu1 %v1666_v19  ;;  %v1644_v63 = vld [vmem:[#allocation6 + $0x328] sm:$0xff]  ;;  %v1579_v19 = vld [vmem:[#allocation6 + $0x120] sm:$0xff] }
 0x2a2   : > { %1720 = vmatpush2.msra.mxu0 %v1601_v2  ;;  %1791 = vmatpush2.msra.mxu1 %v1665_v20  ;;  %v1643_v2 = vld [vmem:[#allocation6 + $0x320] sm:$0xff]  ;;  %v1578_v20 = vld [vmem:[#allocation6 + $0x118] sm:$0xff] }
 0x2a3   : > { %1721 = vmatprep.subr.mxu0 %v1600_v1  ;;  %1792 = vmatprep.subr.mxu1 %v1664_v5  ;;  %v1642_v1 = vld [vmem:[#allocation6 + $0x318] sm:$0xff]  ;;  %v1577_v5 = vld [vmem:[#allocation6 + $0x110] sm:$0xff] }
 0x2a4   : > { %1722 = vmatpush2.msra.mxu0 %v1599_v21  ;;  %1793 = vmatpush2.msra.mxu1 %v1663_v22  ;;  %v1641_v21 = vld [vmem:[#allocation6 + $0x310] sm:$0xff]  ;;  %v1576_v22 = vld [vmem:[#allocation6 + $0x108] sm:$0xff] }
 0x2a5   : > { %1723 = vmatprep.subr.mxu0 %v1598_v23  ;;  %1794 = vmatprep.subr.mxu1 %v1662_v24  ;;  %v1640_v23 = vld [vmem:[#allocation6 + $0x308] sm:$0xff]  ;;  %v1575_v24 = vld [vmem:[#allocation6 + $0x100] sm:$0xff] }
 0x2a6   : > { %1724 = vmatpush2.msra.mxu0 %v1597_v25  ;;  %1795 = vmatpush2.msra.mxu1 %v1661_v26  ;;  %v1639_v25 = vld [vmem:[#allocation6 + $0x300] sm:$0xff]  ;;  %v1856_v26 = vld [vmem:[%s2730_s6 + $0xf8] sm:$0xff] }
 0x2a7   : > { %1725 = vmatprep.subr.mxu0 %v1596_v28  ;;  %1796 = vmatprep.subr.mxu1 %v1660_v29 }
 0x2a8   : > { %1726 = vmatpush2.msra.mxu0 %v1595_v30  ;;  %1797 = vmatpush2.msra.mxu1 %v1659_v31 }
 0x2a9   : > { %1727 = vmatprep.subr.mxu0 %v1594_v17  ;;  %1798 = vmatprep.subr.mxu1 %v1658_v32 }
 0x2aa   : > { %1728 = vmatpush2.msra.mxu0 %v1593_v46  ;;  %1799 = vmatpush2.msra.mxu1 %v1657_v47  ;;  %v1836_v46 = vld [vmem:[%s2730_s6 + $0x58] sm:$0xff]  ;;  %v1851_v47 = vld [vmem:[%s2730_s6 + $0xd0] sm:$0xff] }
 0x2ab   : > { %1729 = vmatprep.subr.mxu0 %v1592_v48  ;;  %1800 = vmatprep.subr.mxu1 %v1656_v49  ;;  %v1835_v48 = vld [vmem:[%s2730_s6 + $0x50] sm:$0xff]  ;;  %v1850_v49 = vld [vmem:[%s2730_s6 + $0xc8] sm:$0xff] }
 0x2ac   : > { %1730 = vmatpush2.msra.mxu0 %v1591_v50  ;;  %1801 = vmatpush2.msra.mxu1 %v1655_v27  ;;  %v1834_v50 = vld [vmem:[%s2730_s6 + $0x48] sm:$0xff]  ;;  %v1849_v27 = vld [vmem:[%s2730_s6 + $0xc0] sm:$0xff] }
 0x2ad   : > { %1731 = vmatprep.subr.mxu0 %v1590_v51  ;;  %1802 = vmatprep.subr.mxu1 %v1654_v53  ;;  %v1833_v51 = vld [vmem:[%s2730_s6 + $0x40] sm:$0xff]  ;;  %v1848_v53 = vld [vmem:[%s2730_s6 + $0xb8] sm:$0xff] }
 0x2ae   : > { %1732 = vmatpush2.msra.mxu0 %v1589_v54  ;;  %1803 = vmatpush2.msra.mxu1 %v1653_v58  ;;  %v1832_v54 = vld [vmem:[%s2730_s6 + $0x38] sm:$0xff]  ;;  %v1847_v58 = vld [vmem:[%s2730_s6 + $0xb0] sm:$0xff] }
 0x2af   : > { %1733 = vmatprep.subr.mxu0 %v1588_v44  ;;  %1804 = vmatprep.subr.mxu1 %v1652_v59  ;;  %v1831_v44 = vld [vmem:[%s2730_s6 + $0x30] sm:$0xff]  ;;  %v1846_v59 = vld [vmem:[%s2730_s6 + $0xa8] sm:$0xff] }
 0x2b0   : > { %1734 = vmatpush2.msra.mxu0 %v1587_v60  ;;  %1805 = vmatpush2.msra.mxu1 %v1651_v61  ;;  %v1830_v60 = vld [vmem:[%s2730_s6 + $0x28] sm:$0xff]  ;;  %v1845_v61 = vld [vmem:[%s2730_s6 + $0xa0] sm:$0xff] }
 0x2b1   : > { %1735 = vmatprep.subr.mxu0 %v1586_v62  ;;  %1806 = vmatprep.subr.mxu1 %v1650_v0  ;;  %v1829_v62 = vld [vmem:[%s2730_s6 + $0x20] sm:$0xff]  ;;  %v1844_v0 = vld [vmem:[%s2730_s6 + $0x98] sm:$0xff] }
 0x2b2   : > { %1736 = vmatpush2.msra.mxu0 %v1585_v3  ;;  %1807 = vmatpush2.msra.mxu1 %v1649_v4  ;;  %v1828_v3 = vld [vmem:[%s2730_s6 + $0x18] sm:$0xff]  ;;  %v1843_v4 = vld [vmem:[%s2730_s6 + $0x90] sm:$0xff] }
 0x2b3   : > { %1737 = vmatprep.subr.mxu0 %v1584_v6  ;;  %1808 = vmatprep.subr.mxu1 %v1648_v7  ;;  %v1827_v6 = vld [vmem:[%s2730_s6 + $0x10] sm:$0xff]  ;;  %v1842_v7 = vld [vmem:[%s2730_s6 + $0x88] sm:$0xff] }
 0x2b4   : > { %1738 = vmatpush2.msra.mxu0 %v1583_v8  ;;  %1809 = vmatpush2.msra.mxu1 %v1647_v9  ;;  %v1826_v8 = vld [vmem:[%s2730_s6 + $0x8] sm:$0xff]  ;;  %v1841_v9 = vld [vmem:[%s2730_s6 + $0x80] sm:$0xff] }
 0x2b5   : > { %1739 = vmatprep.subr.mxu0 %v1582_v10  ;;  %1810 = vmatprep.subr.mxu1 %v1646_v11  ;;  %v1825_v10 = vld [vmem:[%s2730_s6] sm:$0xff]  ;;  %v1941_v11 = vld [vmem:[%s2732_s8 + $0x38] sm:$0xff] }
 0x2b6   : > { %1740 = vmatpush2.msra.mxu0 %v1581_v12  ;;  %1811 = vmatpush2.msra.mxu1 %v1645_v13  ;;  %v2359_v12 = vmov 0.0   ;;  %v1940_v13 = vld [vmem:[%s2732_s8 + $0x30] sm:$0xff] }
 0x2b7   : > { %1741 = vmatprep.subr.mxu0 %v1580_v14  ;;  %1812 = vmatprep.subr.mxu1 %v1644_v63  ;;  %v1939_v14 = vld [vmem:[%s2732_s8 + $0x28] sm:$0xff]  ;;  %v1938_v63 = vld [vmem:[%s2732_s8 + $0x20] sm:$0xff] }
 0x2b8   : > { %1742 = vmatpush2.msra.mxu0 %v1579_v19  ;;  %1813 = vmatpush2.msra.mxu1 %v1643_v2  ;;  %v1671_v19 = vld [vmem:[%s2729_s5] sm:$0x3] }
 0x2b9   : > { %1743 = vmatprep.subr.mxu0 %v1578_v20  ;;  %1814 = vmatprep.subr.mxu1 %v1642_v1  ;;  %v1676_v2 = vrot.slane %v1671_v19, %v666_v16  ;;  %v1680_v20 = vrot.slane %v1671_v19, %v670_v18  ;;  %v1935_v16 = vld [vmem:[%s2732_s8 + $0x8] sm:$0xff]  ;;  %v1934_v18 = vld [vmem:[%s2732_s8] sm:$0xff] }
 0x2ba   : > { %1744 = vmatpush2.msra.mxu0 %v1577_v5  ;;  %1815 = vmatpush2.msra.mxu1 %v1641_v21 }
 0x2bb   : > { %1745 = vmatprep.subr.mxu0 %v1576_v22  ;;  %1816 = vmatprep.subr.mxu1 %v1640_v23 }
 0x2bc   : > { %1746 = vmatpush2.msra.mxu0 %v1575_v24  ;;  %1817 = vmatpush2.msra.mxu1 %v1639_v25 }
 0x2bd   : > { %2128 = vmatprep.subr.mxu0 %v1856_v26  ;;  %2172 = vmatprep.subr.mxu1 %v2359_v12 }
 0x321   : > { %v1516_v33 = vpop.xlane.xlu0 %1515 }
 0x322   : > { %v1517_v34 = vsub.f32 %v2550_v55, %v1516_v33  ;;  %v1518_v35 = vsub.f32 %v2548_v52, %v1516_v33  ;;  %v1519_v36 = vsub.f32 %v2552_v56, %v1516_v33  ;;  %v1520_v37 = vsub.f32 %v2554_v57, %v1516_v33  ;;  %v2254_v33 = vld [vmem:[%s2499_s21 + $0x8] sm:$0xff] }
 0x324   : > { %v1521_v38 = vmul.f32 1.442695, %v1517_v34  ;;  %v1523_v39 = vmul.f32 1.442695, %v1518_v35  ;;  %v1525_v40 = vmul.f32 1.442695, %v1519_v36 }
 0x325   : > { %v1527_v41 = vmul.f32 1.442695, %v1520_v37  ;;  %v2255_v35 = vld [vmem:[%s2499_s21 + $0x18] sm:$0xff]  ;;  %v2256_v37 = vld [vmem:[%s2499_s21] sm:$0xff] }
 0x326   : > { %2244 = vpow2.f32 %v1521_v38 }
 0x327   : > { %2246 = vpow2.f32 %v1523_v39  ;;  %v2257_v39 = vld [vmem:[%s2499_s21 + $0x10] sm:$0xff] }
 0x328   : > { %2248 = vpow2.f32 %v1525_v40 }
 0x329   : > { %2250 = vpow2.f32 %v1527_v41  ;;  %v1840_v41 = vld [vmem:[%s2730_s6 + $0x78] sm:$0xff] }
 0x333   : > { %v2564_v42 = vpop.eup %2244 }
 0x334   : > { %v2566_v43 = vpop.eup %2246 }
 0x335   : > { %v1529_v55 = vadd.f32 %v2566_v43, %v2564_v42  ;;  %v2570_v52 = vpop.eup %2248 }
 0x336   : > { %v2573_v57 = vpop.eup %2250 }
 0x337   : > { %v1530_v56 = vadd.f32 %v2570_v52, %v1529_v55  ;;  %v1854_v55 = vld [vmem:[%s2730_s6 + $0xe8] sm:$0xff] }
 0x339   : > { %v1531_v45 = vadd.f32 %v2573_v57, %v1530_v56  ;;  %v1853_v56 = vld [vmem:[%s2730_s6 + $0xe0] sm:$0xff] }
 0x33b   : > { %1532 = vadd.xlane.f32.xlu0 %v1531_v45  ;;  %v1852_v45 = vld [vmem:[%s2730_s6 + $0xd8] sm:$0xff] }
 0x3c4   : > { %v1533_v28 = vpop.xlane.xlu0 %1532 }
 0x3c5   : > { %2252 = vrcp.f32 %v1533_v28  ;;  %v1937_v28 = vld [vmem:[%s2732_s8 + $0x18] sm:$0xff] }
 0x3d2   : > { %v2253_v29 = vpop.eup %2252 }
 0x3d3   : > { %v1536_v30 = vmul.f32 %v2253_v29, %v2566_v43  ;;  %v1538_v31 = vmul.f32 %v2253_v29, %v2573_v57  ;;  %v1535_v17 = vmul.f32 %v2253_v29, %v2564_v42  ;;  %v1537_v32 = vmul.f32 %v2253_v29, %v2570_v52  ;;  %v1855_v42 = vld [vmem:[%s2730_s6 + $0xf0] sm:$0xff]  ;;  %v1838_v52 = vld [vmem:[%s2730_s6 + $0x68] sm:$0xff]  ;;  %v1837_v57 = vld [vmem:[%s2730_s6 + $0x60] sm:$0xff] }
 0x3d4   : > { %v1839_v43 = vld [vmem:[%s2730_s6 + $0x70] sm:$0xff] }
 0x3d5   : > { %v1540_v34 = vmul.f32 %v2254_v33, %v1536_v30  ;;  %v1542_v36 = vmul.f32 %v2255_v35, %v1538_v31  ;;  %v1539_v38 = vmul.f32 %v2256_v37, %v1535_v17  ;;  %v1541_v40 = vmul.f32 %v2257_v39, %v1537_v32  ;;  %v2122_v30 = vld [vmem:[%s2731_s7] ss:$0 sm:$0xff] }
 0x3d6   : > { %v2123_v33 = vld [vmem:[%s2733_s9] ss:$0 sm:$0xff] }
 0x3d7   : > { %1747 = vmatprep.mubr.f32.mxu0 %v1540_v34  ;;  %1818 = vmatprep.mubr.f32.mxu1 %v1542_v36 }
 0x3d8   : > { %1748 = vmatmul.mubr.f32.vlgmr.msra.gmra.mxu0 %v1539_v38  ;;  %1819 = vmatmul.mubr.f32.vlgmr.msra.gmra.mxu1 %v1541_v40 }
 0x3d9   : > { %2129 = vmatpush3.msra.mxu0 %v1840_v41  ;;  %2173 = vmatpush3.msra.mxu1 %v1941_v11 }
 0x3da   : > { %2130 = vmatprep.subr.mxu0 %v1855_v42  ;;  %2174 = vmatprep.subr.mxu1 %v2359_v12 }
 0x3db   : > { %2131 = vmatpush3.msra.mxu0 %v1839_v43  ;;  %2175 = vmatpush3.msra.mxu1 %v1940_v13 }
 0x3dc   : > { %2132 = vmatprep.subr.mxu0 %v1854_v55  ;;  %2176 = vmatprep.subr.mxu1 %v2359_v12 }
 0x3dd   : > { %2133 = vmatpush3.msra.mxu0 %v1838_v52  ;;  %2177 = vmatpush3.msra.mxu1 %v1939_v14 }
 0x3de   : > { %2134 = vmatprep.subr.mxu0 %v1853_v56  ;;  %2178 = vmatprep.subr.mxu1 %v2359_v12 }
 0x3df   : > { %2135 = vmatpush3.msra.mxu0 %v1837_v57  ;;  %2179 = vmatpush3.msra.mxu1 %v1938_v63 }
 0x3e0   : > { %2136 = vmatprep.subr.mxu0 %v1852_v45  ;;  %2180 = vmatprep.subr.mxu1 %v2359_v12 }
 0x3e1   : > { %2137 = vmatpush3.msra.mxu0 %v1836_v46  ;;  %2181 = vmatpush3.msra.mxu1 %v1937_v28 }
 0x3e2   : > { %2138 = vmatprep.subr.mxu0 %v1851_v47  ;;  %2182 = vmatprep.subr.mxu1 %v2359_v12 }
 0x3e3   : > { %2139 = vmatpush3.msra.mxu0 %v1835_v48  ;;  %2183 = vmatpush3.msra.mxu1 %v1936_v15 }
 0x3e4   : > { %2140 = vmatprep.subr.mxu0 %v1850_v49  ;;  %2184 = vmatprep.subr.mxu1 %v2359_v12 }
 0x3e5   : > { %2141 = vmatpush3.msra.mxu0 %v1834_v50  ;;  %2185 = vmatpush3.msra.mxu1 %v1935_v16 }
 0x3e6   : > { %2142 = vmatprep.subr.mxu0 %v1849_v27  ;;  %2188 = vmatprep.mubr.msk.f32.mxu1 %vm2360_vm0, %v2359_v12 }
 0x3e7   : > { %2143 = vmatpush3.msra.mxu0 %v1833_v51  ;;  %2186 = vmatprep.subr.mxu1 %v2359_v12 }
 0x3e8   : > { %2144 = vmatprep.subr.mxu0 %v1848_v53  ;;  %2187 = vmatpush3.msra.mxu1 %v1934_v18 }
 0x3e9   : > { %2145 = vmatpush3.msra.mxu0 %v1832_v54 }
 0x3ea   : > { %2146 = vmatprep.subr.mxu0 %v1847_v58 }
 0x3eb   : > { %2147 = vmatpush3.msra.mxu0 %v1831_v44 }
 0x3ec   : > { %2148 = vmatprep.subr.mxu0 %v1846_v59 }
 0x3ed   : > { %2149 = vmatpush3.msra.mxu0 %v1830_v60 }
 0x3ee   : > { %2150 = vmatprep.subr.mxu0 %v1845_v61 }
 0x3ef   : > { %2151 = vmatpush3.msra.mxu0 %v1829_v62 }
 0x3f0   : > { %2152 = vmatprep.subr.mxu0 %v1844_v0 }
 0x3f1   : > { %2153 = vmatpush3.msra.mxu0 %v1828_v3 }
 0x3f2   : > { %2154 = vmatprep.subr.mxu0 %v1843_v4 }
 0x3f3   : > { %2155 = vmatpush3.msra.mxu0 %v1827_v6 }
 0x3f4   : > { %2156 = vmatprep.subr.mxu0 %v1842_v7 }
 0x3f5   : > { %2157 = vmatpush3.msra.mxu0 %v1826_v8 }
 0x3f6   : > { %2158 = vmatprep.subr.mxu0 %v1841_v9 }
 0x3f7   : > { %2159 = vmatpush3.msra.mxu0 %v1825_v10 }
 0x498   : > { %v1749_v1 = vpop.f32.mrf.mxu0  ;;  %v1820_v5 = vpop.f32.mrf.mxu1 }
 0x499   : > { %v1750_v21 = vadd.f32 %v1749_v1, %v1676_v2 }
 0x49a   : > { %v1751_v22 = vpop.f32.mrf.mxu0  ;;  %v1822_v24 = vpop.f32.mrf.mxu1 }
 0x49b   : > { %v1752_v23 = vadd.f32 %v1751_v22, %v1680_v20  ;;  %v1821_v26 = vadd.f32 %v1820_v5, %v1750_v21 }
 0x49d   : > { %v1823_v25 = vadd.f32 %v1822_v24, %v1752_v23 }
 0x49f   : > { %1928 = vmatprep.mubr.f32.mxu0 %v1823_v25 }
 0x4a0   : > { %1929 = vmatmul.mubr.f32.vlgmr.msra.gmra.mxu0 %v1821_v26 }
 0x560   : > { %v2160_v29 = vpop.f32.mrf.mxu0 }
 0x562   : > { %v2161_v31 = vpop.f32.mrf.mxu0 }
 0x563   : > { %v2162_v17 = vadd.f32 %v2161_v31, %v2160_v29 }
 0x565   : > { %v1931_v32 = vadd.f32 %v2162_v17, %v2122_v30 }
 0x567   : > { %2189 = vmatmul.mubr.msk.f32.vlgmr.msra.gmra.mxu1 %vm1949_vm1, %v1931_v32 }
 0x627   : > { %v2019_v34 = vpop.f32.mrf.mxu1 }
 0x628   : > { %v2020_v35 = vadd.f32 %v2123_v33, %v2019_v34 }
 0x629   : > { %v2190_v36 = vpop.f32.mrf.mxu1 }
 0x62a   : > { %2023 = vst [vmem:[%s401_s23] sm:$0xff] %v2020_v35 }
 0x62b PF: > { %s22_s13 = sadd.s32 1, %s2350_s13  }
 0x62c   : > { %p19_p3 = scmp.ge.s32.totalorder %s22_s13, 4  }
 0x62e   :  { %21 = sbr.rel (!%p19_p3) target bundleno = 2 (0x2), region = 103 }
 0x633   :  { %2043 = vsyncpa [#allocation3], 1 }
 0x634   :  { %2045 = vsyncpa [#allocation3 + $0x1], 1 }
 0x635   :  { %2046 = vsyncpa [#allocation5], 1 }

</bundles_post_ra>
